<compile_context>
chip_gen: v6e
topology: v6e:2x2x1
jax: 0.10.0
libtpu: 0.0.40
codegen_flags: <defaults>
</compile_context>

<pallas_src>
import functools

import jax
import jax.numpy as jnp
from jax.experimental import pallas as pl
from jax.experimental.pallas import tpu as pltpu


def _round_up(x, m):
    return (x + m - 1) // m * m


def _cdiv(a, b):
    return -(-a // b)


def _pick_div(x, cap):
    """Largest multiple of 128 that divides x (x % 128 == 0) and is <= cap."""
    best = 128
    d = 128
    while d <= min(cap, x):
        if x % d == 0:
            best = d
        d += 128
    return best


def _pad2(x, rows, cols):
    r, c = rows - x.shape[0], cols - x.shape[1]
    if r == 0 and c == 0:
        return x
    return jnp.pad(x, ((0, r), (0, c)))


def _pad1(x, n):
    d = n - x.shape[0]
    return x if d == 0 else jnp.pad(x, (0, d))


# -----------------------------------------------------------------------------
# Pallas kernel 1: tiled bf16 MXU matmul with fused prologue / epilogue.
#   A (bf16, TMxTK), optionally pre-activated in bf16: relu(A * pre_s + pre_t)
#   acc(f32)        += A @ B over the K grid axis (resident VMEM scratch)
#   epilogue:  y = acc * s + t  [+ residual]  [* post_s + post_t]  [relu]
# -----------------------------------------------------------------------------
def _matmul_kernel(*refs, relu, has_res, has_pre, has_post):
    it = iter(refs)
    a_ref = next(it)
    b_ref = next(it)
    ps_ref = next(it) if has_pre else None
    pt_ref = next(it) if has_pre else None
    s_ref = next(it)
    t_ref = next(it)
    qs_ref = next(it) if has_post else None
    qt_ref = next(it) if has_post else None
    r_ref = next(it) if has_res else None
    o_ref = next(it)
    acc_ref = next(it)

    k = pl.program_id(2)

    @pl.when(k == 0)
    def _():
        acc_ref[...] = jnp.zeros_like(acc_ref)

    a = a_ref[...]
    if has_pre:
        # bf16 pre-activation (halves VPU slot pressure vs f32 round-trip)
        a = jnp.maximum(a * ps_ref[...] + pt_ref[...], 0.0)
    acc_ref[...] += jnp.dot(a, b_ref[...], preferred_element_type=jnp.float32)

    @pl.when(k == pl.num_programs(2) - 1)
    def _():
        y = acc_ref[...] * s_ref[...] + t_ref[...]
        if has_res:
            y = y + r_ref[...].astype(jnp.float32)
        if has_post:
            y = y * qs_ref[...] + qt_ref[...]
        if relu:
            y = jnp.maximum(y, 0.0)
        o_ref[...] = y.astype(o_ref.dtype)


@functools.partial(jax.jit, static_argnames=("relu", "tm", "tn", "tk"))
def _matmul_pallas(a_p, b_p, ps_p, pt_p, s_p, t_p, qs_p, qt_p, r_p,
                   relu, tm, tn, tk):
    Mp, Kp = a_p.shape
    Np = b_p.shape[1]
    grid = (Mp // tm, Np // tn, Kp // tk)
    has_pre = ps_p is not None
    has_post = qs_p is not None
    has_res = r_p is not None

    in_specs = [
        pl.BlockSpec((tm, tk), lambda i, j, k: (i, k)),
        pl.BlockSpec((tk, tn), lambda i, j, k: (k, j)),
    ]
    args = [a_p, b_p]
    if has_pre:
        in_specs += [pl.BlockSpec((1, tk), lambda i, j, k: (0, k))] * 2
        args += [ps_p, pt_p]
    in_specs += [pl.BlockSpec((1, tn), lambda i, j, k: (0, j))] * 2
    args += [s_p, t_p]
    if has_post:
        in_specs += [pl.BlockSpec((1, tn), lambda i, j, k: (0, j))] * 2
        args += [qs_p, qt_p]
    if has_res:
        in_specs.append(pl.BlockSpec((tm, tn), lambda i, j, k: (i, j)))
        args.append(r_p)

    kernel = functools.partial(_matmul_kernel, relu=relu, has_res=has_res,
                               has_pre=has_pre, has_post=has_post)
    return pl.pallas_call(
        kernel,
        out_shape=jax.ShapeDtypeStruct((Mp, Np), jnp.bfloat16),
        grid_spec=pltpu.PrefetchScalarGridSpec(
            num_scalar_prefetch=0,
            grid=grid,
            in_specs=in_specs,
            out_specs=pl.BlockSpec((tm, tn), lambda i, j, k: (i, j)),
            scratch_shapes=[pltpu.VMEM((tm, tn), jnp.float32)],
        ),
        compiler_params=pltpu.CompilerParams(
            dimension_semantics=("parallel", "parallel", "arbitrary"),
            vmem_limit_bytes=48 * 1024 * 1024),
    )(*args)


def matmul_affine(a, b_p, n_out, scale, shift, relu=False, residual=None,
                  pre_scale=None, pre_shift=None,
                  post_scale=None, post_shift=None):
    """out = [relu]([post*]((relu(a*pre))? @ b) * scale + shift [+ residual]).

    `b_p` is a pre-packed, pre-padded bf16 weight of shape (Kp, Np)."""
    M, K = a.shape
    Kp, Np = b_p.shape
    assert Kp == _round_up(K, 128)

    TM = min(1024, _round_up(M, 8))
    TN = _pick_div(Np, 512)
    TK = _pick_div(Kp, min(512, max(128, Kp // 2)))   # >=2 K steps when Kp>=256
    Mp = _round_up(M, TM)

    a_p = _pad2(a.astype(jnp.bfloat16), Mp, Kp)
    s_p = _pad1(scale.astype(jnp.float32), Np).reshape(1, Np)
    t_p = _pad1(shift.astype(jnp.float32), Np).reshape(1, Np)
    ps_p = pt_p = qs_p = qt_p = r_p = None
    if pre_scale is not None:
        ps_p = _pad1(pre_scale.astype(jnp.bfloat16), Kp).reshape(1, Kp)
        pt_p = _pad1(pre_shift.astype(jnp.bfloat16), Kp).reshape(1, Kp)
    if post_scale is not None:
        qs_p = _pad1(post_scale.astype(jnp.float32), Np).reshape(1, Np)
        qt_p = _pad1(post_shift.astype(jnp.float32), Np).reshape(1, Np)
    if residual is not None:
        r_p = _pad2(residual.astype(jnp.bfloat16), Mp, Np)

    out = _matmul_pallas(a_p, b_p, ps_p, pt_p, s_p, t_p, qs_p, qt_p, r_p,
                         relu=relu, tm=TM, tn=TN, tk=TK)
    if Mp != M or Np != n_out:
        out = out[:M, :n_out]
    return out


# -----------------------------------------------------------------------------
# Pallas kernel 2: direct KxK stride-1 convolution (no im2col in HBM).
# The flattened spatially-padded input stays in HBM; each grid step DMAs one
# halo strip of rows into VMEM and accumulates kh*kw shifted-window matmuls.
# -----------------------------------------------------------------------------
def _dconv_kernel(a_hbm, b_ref, sc_ref, sh_ref, o_ref, strip, acc, sem,
                  *, taps, kw, wshift, tm, relu):
    i = pl.program_id(0)
    k = pl.program_id(2)
    strip_rows, tk = strip.shape

    row0 = pl.multiple_of(i * tm, 8)
    col0 = pl.multiple_of(k * tk, 128)
    cp = pltpu.make_async_copy(
        a_hbm.at[pl.ds(row0, strip_rows), pl.ds(col0, tk)], strip, sem)
    cp.start()

    @pl.when(k == 0)
    def _():
        acc[...] = jnp.zeros_like(acc)

    cp.wait()

    for t in range(taps):                       # static unrolled tap loop
        off = (t // kw) * wshift + (t % kw)     # static shift in flat rows
        acc[...] += jnp.dot(strip[off:off + tm, :], b_ref[t],
                            preferred_element_type=jnp.float32)

    @pl.when(k == pl.num_programs(2) - 1)
    def _():
        y = acc[...] * sc_ref[...] + sh_ref[...]
        if relu:
            y = jnp.maximum(y, 0.0)
        o_ref[...] = y.astype(o_ref.dtype)


@functools.partial(jax.jit, static_argnames=("taps", "kw", "wshift", "relu",
                                             "tm", "tn", "tk", "m_blocks",
                                             "strip_rows"))
def _direct_conv_pallas(a_flat, b_p, s_p, t_p, *, taps, kw, wshift, relu,
                        tm, tn, tk, m_blocks, strip_rows):
    T, Cp, Op = b_p.shape
    grid = (m_blocks, Op // tn, Cp // tk)
    kernel = functools.partial(_dconv_kernel, taps=taps, kw=kw, wshift=wshift,
                               tm=tm, relu=relu)
    return pl.pallas_call(
        kernel,
        out_shape=jax.ShapeDtypeStruct((m_blocks * tm, Op), jnp.bfloat16),
        grid_spec=pltpu.PrefetchScalarGridSpec(
            num_scalar_prefetch=0,
            grid=grid,
            in_specs=[
                pl.BlockSpec(memory_space=pl.ANY),                   # input, HBM
                pl.BlockSpec((T, tk, tn), lambda i, j, k: (0, k, j)),  # taps of W
                pl.BlockSpec((1, tn), lambda i, j, k: (0, j)),
                pl.BlockSpec((1, tn), lambda i, j, k: (0, j)),
            ],
            out_specs=pl.BlockSpec((tm, tn), lambda i, j, k: (i, j)),
            scratch_shapes=[
                pltpu.VMEM((strip_rows, tk), jnp.bfloat16),   # input halo strip
                pltpu.VMEM((tm, tn), jnp.float32),            # accumulator
                pltpu.SemaphoreType.DMA(()),
            ],
        ),
        compiler_params=pltpu.CompilerParams(
            dimension_semantics=("parallel", "parallel", "arbitrary"),
            vmem_limit_bytes=48 * 1024 * 1024),
    )(a_flat, b_p, s_p, t_p)


def conv2d_direct(x, wp, *, k, pad, scale, shift, relu, out_ch):
    """Stride-1 KxK conv. x: (N,H,W,C) bf16; wp: packed (k*k, Cp, Op) bf16."""
    N, H, W, C = x.shape
    T, Cp, Op = wp.shape
    Hp, Wq = H + 2 * pad, W + 2 * pad
    Ho, Wo = Hp - k + 1, Wq - k + 1
    M_out = N * Hp * Wq                     # output iterated on the padded grid
    max_shift = (k - 1) * Wq + (k - 1)

    TM = min(1024, _round_up(M_out, 128))
    TN = _pick_div(Op, 512)
    TK = _pick_div(Cp, 512)
    m_blocks = _cdiv(M_out, TM)
    strip_rows = _round_up(TM + max_shift, 8)
    rows_needed = (m_blocks - 1) * TM + strip_rows
    extra_n = max(0, _cdiv(rows_needed - M_out, Hp * Wq))

    # one pad: spatial + channel + tail batch images of zeros (halo slack)
    xp = jnp.pad(x.astype(jnp.bfloat16),
                 ((0, extra_n), (pad, pad), (pad, pad), (0, Cp - C)))
    a_flat = xp.reshape((N + extra_n) * Hp * Wq, Cp)

    s_p = _pad1(scale.astype(jnp.float32), Op).reshape(1, Op)
    t_p = _pad1(shift.astype(jnp.float32), Op).reshape(1, Op)

    out = _direct_conv_pallas(a_flat, wp, s_p, t_p,
                              taps=T, kw=k, wshift=Wq, relu=relu,
                              tm=TM, tn=TN, tk=TK,
                              m_blocks=m_blocks, strip_rows=strip_rows)
    out = out[:M_out].reshape(N, Hp, Wq, Op)[:, :Ho, :Wo, :out_ch]
    return out


# -----------------------------------------------------------------------------
# Conv glue (im2col only for the 7x7 stem and stride-2 3x3 convs)
# -----------------------------------------------------------------------------
def _im2col(x, kh, kw, stride, pad):
    N, H, W, C = x.shape
    Ho = (H + 2 * pad - kh) // stride + 1
    Wo = (W + 2 * pad - kw) // stride + 1
    if kh == 1 and kw == 1 and stride == 1 and pad == 0:
        return x.reshape(N * H * W, C), (N, Ho, Wo)
    xp = jnp.pad(x, ((0, 0), (pad, pad), (pad, pad), (0, 0)))
    cols = []
    for i in range(kh):
        for j in range(kw):
            cols.append(xp[:, i:i + stride * (Ho - 1) + 1:stride,
                            j:j + stride * (Wo - 1) + 1:stride, :])
    patches = jnp.concatenate(cols, axis=-1)   # (N, Ho, Wo, kh*kw*C), (i,j,c)
    return patches.reshape(N * Ho * Wo, kh * kw * C), (N, Ho, Wo)


def apply_conv(x_nhwc, conv_p, stride=1, pad=0, bn=None, relu=False,
               residual=None, pre_bn=None, post_bn=None):
    O, k, mode = conv_p["O"], conv_p["k"], conv_p["mode"]

    if bn is not None:
        scale, shift = bn["scale"], bn["shift"]
    else:
        scale = jnp.ones((O,), jnp.float32)
        shift = jnp.zeros((O,), jnp.float32)
    if conv_p["b"] is not None:          # fold conv bias into the affine epilogue
        shift = shift + scale * conv_p["b"]
    if residual is not None:
        # epilogue order (affine then +skip) is only valid for identity affines
        assert bn is None and conv_p["b"] is None

    if mode == "direct":
        assert stride == 1 and residual is None and pre_bn is None and post_bn is None
        return conv2d_direct(x_nhwc, conv_p["wp"], k=k, pad=pad,
                             scale=scale, shift=shift, relu=relu, out_ch=O)

    pre_scale = pre_shift = post_scale = post_shift = None
    if pre_bn is not None:
        assert k == 1 and pad == 0 and stride == 1
        pre_scale, pre_shift = pre_bn["scale"], pre_bn["shift"]
    if post_bn is not None:
        post_scale, post_shift = post_bn["scale"], post_bn["shift"]

    if k == 1:
        if stride != 1:
            x_nhwc = x_nhwc[:, ::stride, ::stride, :]
        N, Ho, Wo, C = x_nhwc.shape
        a = x_nhwc.reshape(N * Ho * Wo, C)
    else:
        a, (N, Ho, Wo) = _im2col(x_nhwc, k, k, stride, pad)

    res_mat = residual.reshape(N * Ho * Wo, O) if residual is not None else None
    out = matmul_affine(a, conv_p["wp"], O, scale, shift, relu=relu,
                        residual=res_mat,
                        pre_scale=pre_scale, pre_shift=pre_shift,
                        post_scale=post_scale, post_shift=post_shift)
    return out.reshape(N, Ho, Wo, O)


def upsample2(x):  # nn.Upsample(scale_factor=2), mode='nearest', NHWC
    return jnp.repeat(jnp.repeat(x, 2, axis=1), 2, axis=2)


# -----------------------------------------------------------------------------
# Deterministic parameter construction — weights pre-packed / BN pre-folded.
# -----------------------------------------------------------------------------
class ParamGen:
    def __init__(self, seed):
        self.key = jax.random.PRNGKey(seed)
        self.count = 0

    def _next(self):
        self.count += 1
        return jax.random.fold_in(self.key, self.count)

    def conv(self, cin, cout, k, bias=True, stride=1):
        fan_in = cin * k * k
        w = jax.random.normal(self._next(), (cout, cin, k, k), jnp.float32)
        w = w * (1.0 / jnp.sqrt(jnp.float32(fan_in)))
        b = 0.05 * jax.random.normal(self._next(), (cout,), jnp.float32) if bias else None

        Np = _round_up(cout, 128)
        if k == 1:
            mode = "mat"
            wm = w.reshape(cout, cin).T                            # (C, O)
            wp = _pad2(wm.astype(jnp.bfloat16), _round_up(cin, 128), Np)
        elif stride == 1 and cin >= 64:
            mode = "direct"
            wm = jnp.transpose(w, (2, 3, 1, 0)).reshape(k * k, cin, cout)
            Cp = _round_up(cin, 128)
            wp = jnp.pad(wm.astype(jnp.bfloat16),
                         ((0, 0), (0, Cp - cin), (0, Np - cout)))
        else:
            mode = "im2col"
            wm = jnp.transpose(w, (2, 3, 1, 0)).reshape(k * k * cin, cout)
            wp = _pad2(wm.astype(jnp.bfloat16), _round_up(k * k * cin, 128), Np)
        return {"b": b, "k": k, "stride": stride, "O": cout, "mode": mode, "wp": wp}

    def bn(self, c, eps=1e-5):
        gamma = 1.0 + 0.1 * jax.random.normal(self._next(), (c,), jnp.float32)
        beta = 0.1 * jax.random.normal(self._next(), (c,), jnp.float32)
        mean = 0.1 * jax.random.normal(self._next(), (c,), jnp.float32)
        var = 1.0 + 0.1 * jnp.abs(jax.random.normal(self._next(), (c,), jnp.float32))
        scale = gamma / jnp.sqrt(var + eps)
        shift = beta - mean * scale
        return {"scale": scale, "shift": shift}


def res_unit_params(pg, cin, cout, stride):
    internal = cout // 4
    shortcut = pg.conv(cin, cout, 1, bias=False) if (stride != 1 or cin != cout) else None
    return {
        "shortcut": shortcut,
        "conv1": pg.conv(cin, internal, 1, bias=False),
        "bn1": pg.bn(internal),
        "conv2": pg.conv(internal, internal, 3, bias=False, stride=stride),
        "bn2": pg.bn(internal),
        "conv3": pg.conv(internal, cout, 1, bias=False),
    }


def res_block_params(pg, cin, cout, stride, n_units):
    units = [res_unit_params(pg, cin, cout, stride)]
    post_bn = [None]
    for _ in range(n_units - 1):
        units.append(res_unit_params(pg, cout, cout, 1))
        post_bn.append(pg.bn(cout))
    return {"units": units, "post_bn": post_bn, "stride": stride}


def dense_unit_params(pg, cin):
    return {
        "bn1": pg.bn(cin),
        "conv1": pg.conv(cin, 128, 1, bias=True),
        "bn2": pg.bn(128),
        "conv2": pg.conv(128, 32, 5, bias=True),
    }


def dense_block_params(pg, cin, n_units):
    units, d = [], cin
    for _ in range(n_units):
        units.append(dense_unit_params(pg, d))
        d += 32
    return {"units": units, "final_bn": pg.bn(d)}


def decoder_params(pg):
    return {
        "conv1": pg.conv(1024, 256, 5, bias=False),
        "dense1": dense_block_params(pg, 256, 8),
        "conv2": pg.conv(512, 512, 1, bias=False),
        "conv3": pg.conv(512, 128, 5, bias=False),
        "dense2": dense_block_params(pg, 128, 4),
        "conv4": pg.conv(256, 256, 1, bias=False),
        "conv5": pg.conv(256, 64, 5, bias=False),
    }


def encoder_params(pg):
    return {
        "conv1": pg.conv(3, 64, 7, bias=True),
        "bn1": pg.bn(64),
        "block1": res_block_params(pg, 64, 256, 1, 3),
        "block2": res_block_params(pg, 256, 512, 2, 4),
        "block3": res_block_params(pg, 512, 1024, 2, 6),
        "block4": res_block_params(pg, 1024, 2048, 2, 3),
        "conv2": pg.conv(2048, 1024, 1, bias=True),
    }


def hovernet_params(pg, n_classes):
    p = {
        "encoder": encoder_params(pg),
        "np_branch": decoder_params(pg),
        "np_head": pg.conv(64, 2, 1, bias=True),
        "hv_branch": decoder_params(pg),
        "hv_head": pg.conv(64, 2, 1, bias=True),
    }
    branches = ["np_branch", "hv_branch"]
    if n_classes is not None:
        p["nc_branch"] = decoder_params(pg)
        p["nc_head"] = pg.conv(64, n_classes, 1, bias=True)
        branches.append("nc_branch")
    # fuse the three decoders' first conv (identical 5x5 on a shared input)
    p["dec1_branches"] = branches
    p["dec1_wp"] = jnp.concatenate([p[b]["conv1"]["wp"] for b in branches], axis=2)
    return p


# -----------------------------------------------------------------------------
# Forward pass (mirrors the PyTorch module structure; BN/ReLU fully fused)
# -----------------------------------------------------------------------------
def apply_res_unit(x, p, stride, post_bn=None):
    skip = apply_conv(x, p["shortcut"], stride=stride) if p["shortcut"] is not None else x
    out = apply_conv(x, p["conv1"], bn=p["bn1"], relu=True)                          # 1x1
    out = apply_conv(out, p["conv2"], stride=stride, pad=1, bn=p["bn2"], relu=True)  # 3x3
    # 1x1 + skip; the block's following BNReLU (if any) rides the epilogue
    out = apply_conv(out, p["conv3"], residual=skip,
                     post_bn=post_bn, relu=(post_bn is not None))
    return out


def apply_res_block(x, p):
    for idx, (u, pbn) in enumerate(zip(p["units"], p["post_bn"])):
        st = p["stride"] if idx == 0 else 1
        x = apply_res_unit(x, u, st, post_bn=pbn)
    return x


def apply_dense_unit(x, p):
    # bn1+relu fused as pre-activation of the 1x1 conv; bn2+relu as its epilogue
    out = apply_conv(x, p["conv1"], pre_bn=p["bn1"], bn=p["bn2"], relu=True)
    out = apply_conv(out, p["conv2"], pad=2)               # 5x5, direct-conv path
    # center-crop is a no-op (same padding => cropdims == (0, 0))
    return jnp.concatenate([x, out], axis=-1)


def apply_dense_block(x, p):
    for u in p["units"]:
        x = apply_dense_unit(x, u)
    # final BN+ReLU rides the consuming 1x1 conv as its pre-activation
    return x


def apply_encoder(x, p):
    out1 = apply_conv(x, p["conv1"], pad=3, bn=p["bn1"], relu=True)
    out1 = apply_res_block(out1, p["block1"])
    out2 = apply_res_block(out1, p["block2"])
    out3 = apply_res_block(out2, p["block3"])
    out4 = apply_res_block(out3, p["block4"])
    out4 = apply_conv(out4, p["conv2"])
    return [out1, out2, out3, out4]


def apply_decoder(enc, p, conv1_out):
    b1, b2, b3, b4 = enc
    out = apply_dense_block(conv1_out, p["dense1"])
    out = apply_conv(out, p["conv2"], pre_bn=p["dense1"]["final_bn"])
    out = upsample2(out) + b2
    out = apply_conv(out, p["conv3"], pad=2)
    out = apply_dense_block(out, p["dense2"])
    out = apply_conv(out, p["conv4"], pre_bn=p["dense2"]["final_bn"])
    out = upsample2(out) + b1
    out = apply_conv(out, p["conv5"], pad=2)
    return out


def hovernet_forward(x_nchw, params, n_classes):
    # NCHW -> NHWC, bf16 activations end-to-end (fp32 math inside the kernels)
    x = jnp.transpose(x_nchw.astype(jnp.float32), (0, 2, 3, 1)).astype(jnp.bfloat16)
    enc = apply_encoder(x, params["encoder"])
    b1, b2, b3, b4 = enc

    # first decoder conv fused across all branches (shared heaviest input)
    branches = params["dec1_branches"]
    nb = len(branches)
    dec_in = upsample2(b4) + b3
    ident_s = jnp.ones((256 * nb,), jnp.float32)
    ident_t = jnp.zeros((256 * nb,), jnp.float32)
    fused = conv2d_direct(dec_in, params["dec1_wp"], k=5, pad=2,
                          scale=ident_s, shift=ident_t, relu=False,
                          out_ch=256 * nb)

    heads = {"np_branch": "np_head", "hv_branch": "hv_head", "nc_branch": "nc_head"}
    outputs = []
    for bi, bname in enumerate(branches):
        conv1_out = fused[..., bi * 256:(bi + 1) * 256]
        dec = apply_decoder(enc, params[bname], conv1_out)
        outputs.append(apply_conv(dec, params[heads[bname]]))
    # back to NCHW (fp32 logits) to match the PyTorch output convention
    return [jnp.transpose(o, (0, 3, 1, 2)).astype(jnp.float32) for o in outputs]


# -----------------------------------------------------------------------------
if __name__ == "__main__":
    n_classes = 3
    params = hovernet_params(ParamGen(1234), n_classes)

    key = jax.random.PRNGKey(0)
    x = jax.random.normal(key, (2, 3, 32, 32), jnp.float32)  # NCHW, RGB, small spatial

    outs = hovernet_forward(x, params, n_classes)
    outs = jax.block_until_ready(outs)

    expected = [(2, 2, 32, 32), (2, 2, 32, 32), (2, n_classes, 32, 32)]
    assert [tuple(o.shape) for o in outs] == expected, [o.shape for o in outs]
    print("KERNEL_OK")
</pallas_src>

<mosaic_0001>
module attributes {stable_mosaic.version = 11 : i64} {
  func.func @_matmul_kernel(%arg0: i32, %arg1: i32, %arg2: i32, %arg3: memref<1024x128xbf16, #tpu.memory_space<vmem>>, %arg4: memref<128x128xbf16, #tpu.memory_space<vmem>>, %arg5: memref<1x128xf32, #tpu.memory_space<vmem>>, %arg6: memref<1x128xf32, #tpu.memory_space<vmem>>, %arg7: memref<1024x128xbf16, #tpu.memory_space<vmem>>, %arg8: memref<1024x128xf32, #tpu.memory_space<vmem>>) attributes {dimension_semantics = [#tpu.dimension_semantics<parallel>, #tpu.dimension_semantics<parallel>, #tpu.dimension_semantics<arbitrary>], iteration_bounds = array<i64: 2, 1, 2>, scalar_prefetch = 0 : i64, scratch_operands = 1 : i64, tpu.core_type = #tpu.core_type<tc>, window_params = [{transform_indices = @transform_0, window_bounds = array<i64: 1024, 128>}, {transform_indices = @transform_1, window_bounds = array<i64: 128, 128>}, {transform_indices = @transform_2, window_bounds = array<i64: 1, 128>}, {transform_indices = @transform_3, window_bounds = array<i64: 1, 128>}, {transform_indices = @transform_4, window_bounds = array<i64: 1024, 128>}]} {
    %c0_i32 = arith.constant 0 : i32
    %0 = arith.cmpi eq, %arg2, %c0_i32 : i32
    %1 = arith.extui %0 : i1 to i32
    %c0_i32_0 = arith.constant 0 : i32
    %2 = arith.cmpi ne, %1, %c0_i32_0 : i32
    scf.if %2 {
      %cst_9 = arith.constant 0.000000e+00 : f32
      %12 = vector.broadcast %cst_9 : f32 to vector<1024x128xf32>
      %c0_10 = arith.constant 0 : index
      %c0_11 = arith.constant 0 : index
      %13 = vector.load %arg8[%c0_10, %c0_11] : memref<1024x128xf32, #tpu.memory_space<vmem>>, vector<1024x128xf32>
      tpu.vector_store %arg8[%c0_10, %c0_11], %12 {strides = array<i32>} : memref<1024x128xf32, #tpu.memory_space<vmem>>, vector<1024x128xf32>,
    } else {
    }
    %c0 = arith.constant 0 : index
    %c0_1 = arith.constant 0 : index
    %3 = vector.load %arg3[%c0, %c0_1] : memref<1024x128xbf16, #tpu.memory_space<vmem>>, vector<1024x128xbf16>
    %c0_2 = arith.constant 0 : index
    %c0_3 = arith.constant 0 : index
    %4 = vector.load %arg8[%c0_2, %c0_3] : memref<1024x128xf32, #tpu.memory_space<vmem>>, vector<1024x128xf32>
    %c0_4 = arith.constant 0 : index
    %c0_5 = arith.constant 0 : index
    %5 = vector.load %arg4[%c0_4, %c0_5] : memref<128x128xbf16, #tpu.memory_space<vmem>>, vector<128x128xbf16>
    %cst = arith.constant dense<0.000000e+00> : vector<1024x128xf32>
    %6 = tpu.matmul %3, %5, %cst {dimension_numbers = #tpu.dot_dimension_numbers<[1], [0], [0], [1], [0, 0, 1, 1], [], []>} : vector<1024x128xbf16>, vector<128x128xbf16>, vector<1024x128xf32> -> vector<1024x128xf32>
    %7 = arith.addf %4, %6 : vector<1024x128xf32>
    %c0_6 = arith.constant 0 : index
    %c0_7 = arith.constant 0 : index
    %8 = vector.load %arg8[%c0_6, %c0_7] : memref<1024x128xf32, #tpu.memory_space<vmem>>, vector<1024x128xf32>
    tpu.vector_store %arg8[%c0_6, %c0_7], %7 {strides = array<i32>} : memref<1024x128xf32, #tpu.memory_space<vmem>>, vector<1024x128xf32>,
    %c1_i32 = arith.constant 1 : i32
    %9 = arith.cmpi eq, %arg2, %c1_i32 : i32
    %10 = arith.extui %9 : i1 to i32
    %c0_i32_8 = arith.constant 0 : i32
    %11 = arith.cmpi ne, %10, %c0_i32_8 : i32
    scf.if %11 {
      %c0_9 = arith.constant 0 : index
      %c0_10 = arith.constant 0 : index
      %12 = vector.load %arg8[%c0_9, %c0_10] : memref<1024x128xf32, #tpu.memory_space<vmem>>, vector<1024x128xf32>
      %c0_11 = arith.constant 0 : index
      %c0_12 = arith.constant 0 : index
      %13 = vector.load %arg5[%c0_11, %c0_12] : memref<1x128xf32, #tpu.memory_space<vmem>>, vector<1x128xf32>
      %14 = vector.broadcast %13 : vector<1x128xf32> to vector<1024x128xf32>
      %15 = arith.mulf %12, %14 : vector<1024x128xf32>
      %c0_13 = arith.constant 0 : index
      %c0_14 = arith.constant 0 : index
      %16 = vector.load %arg6[%c0_13, %c0_14] : memref<1x128xf32, #tpu.memory_space<vmem>>, vector<1x128xf32>
      %17 = vector.broadcast %16 : vector<1x128xf32> to vector<1024x128xf32>
      %18 = arith.addf %15, %17 : vector<1024x128xf32>
      %cst_15 = arith.constant 0.000000e+00 : f32
      %19 = vector.broadcast %cst_15 : f32 to vector<1024x128xf32>
      %20 = arith.maximumf %18, %19 : vector<1024x128xf32>
      %21 = arith.truncf %20 : vector<1024x128xf32> to vector<1024x128xbf16>
      %c0_16 = arith.constant 0 : index
      %c0_17 = arith.constant 0 : index
      %22 = vector.load %arg7[%c0_16, %c0_17] : memref<1024x128xbf16, #tpu.memory_space<vmem>>, vector<1024x128xbf16>
      tpu.vector_store %arg7[%c0_16, %c0_17], %21 {strides = array<i32>} : memref<1024x128xbf16, #tpu.memory_space<vmem>>, vector<1024x128xbf16>,
    } else {
    }
    return
  }
  func.func @transform_0(%arg0: i32, %arg1: i32, %arg2: i32) -> (i32, i32) {
    %c0_i32 = arith.constant 0 : i32
    return %arg0, %arg2 : i32, i32
  }
  func.func @transform_1(%arg0: i32, %arg1: i32, %arg2: i32) -> (i32, i32) {
    %c0_i32 = arith.constant 0 : i32
    return %arg2, %arg1 : i32, i32
  }
  func.func @transform_2(%arg0: i32, %arg1: i32, %arg2: i32) -> (i32, i32) {
    %c0_i32 = arith.constant 0 : i32
    %c0_i32_0 = arith.constant 0 : i32
    return %c0_i32, %arg1 : i32, i32
  }
  func.func @transform_3(%arg0: i32, %arg1: i32, %arg2: i32) -> (i32, i32) {
    %c0_i32 = arith.constant 0 : i32
    %c0_i32_0 = arith.constant 0 : i32
    return %c0_i32, %arg1 : i32, i32
  }
  func.func @transform_4(%arg0: i32, %arg1: i32, %arg2: i32) -> (i32, i32) {
    %c0_i32 = arith.constant 0 : i32
    return %arg0, %arg1 : i32, i32
  }
}

</mosaic_0001>

<bundles_post_ra>
// kernel: _matmul_pallas.1
= control target key start
LH: loop header
LB: loop body
LE: loop exit
PB: predicated region body
PF: predicated region fallthrough
CT: control target
= control target key end

     0   :  { %s5538_s0 = inlined_call_operand.hbm [shape: bf16[2048,256], index: 0, kind: input, shape index: {}]   ;;  %s5539_s1 = inlined_call_operand.hbm [shape: bf16[256,128], index: 1, kind: input, shape index: {}]   ;;  %s5540_s2 = inlined_call_operand.vmem [shape: f32[1,128], index: 2, kind: input, shape index: {}]   ;;  %s5541_s3 = inlined_call_operand.vmem [shape: f32[1,128], index: 3, kind: input, shape index: {}]   ;;  %s5542_s4 = inlined_call_operand.hbm [shape: bf16[2048,128], index: 4, kind: output, shape index: {}]  }
   0x1   :  { %5551 = sst [smem:[#allocation17_spill]] %s5538_s0 }
   0x2   :  { %5552 = sst [smem:[#allocation18_spill]] %s5539_s1 }
   0x3   :  { %5553 = sst [smem:[#allocation19_spill]] %s5540_s2 }
   0x4   :  { %5554 = sst [smem:[#allocation20_spill]] %s5541_s3 }
   0x5   :  { %5555 = sst [smem:[#allocation21_spill]] %s5542_s4 }
   0x6   :  { %9 = vsyncpa [#allocation4], 0 }
   0x7   :  { %11 = vsyncpa [#allocation4 + $0x1], 0 }
   0x8   :  { %12 = vsyncpa [#allocation7], 0 }
   0x9   :  { %14 = vsyncpa [#allocation7 + $0x1], 0 }
   0xa   :  { %15 = vsyncpa [#allocation5], 0 }
   0xb   :  { %17 = vsyncpa [#allocation5 + $0x1], 0  ;;  %s4701_s15 = smov 0   ;;  %s4703_s16 = smov 0  }
   0xc   :  { %s4705_s17 = smov 0   ;;  %s4707_s18 = smov 0  }
   0xd   :  { %s4709_s19 = smov 0   ;;  %s4711_s20 = smov 0  }
   0xe   :  { %s4713_s21 = smov 0   ;;  %s4715_s22 = smov 0  }
   0xf   :  { %s4717_s23 = smov 0   ;;  %s4719_s24 = smov 0  }
  0x10   :  { %s4721_s25 = smov 0   ;;  %s4723_s26 = smov 0  }
  0x11   :  { %s4725_s27 = smov 0   ;;  %s4727_s28 = smov 0  }
  0x12 LB: > { %5556 = sst [smem:[#allocation12_spill]] %s4613_s15  ;;  %s35_s29 = sadd.s32 1, %s4657_s26  ;;  %s4665_s28 = sphi %s4727_s28, %s23_s28   ;;  %s4661_s27 = sphi %s4725_s27, %s5598_s27   ;;  %s4657_s26 = sphi %s4723_s26, %s5597_s26   ;;  %s4653_s25 = sphi %s4721_s25, %s5596_s25   ;;  %s4649_s24 = sphi %s4719_s24, %s5595_s24   ;;  %s4645_s23 = sphi %s4717_s23, %s5594_s23   ;;  %s4641_s22 = sphi %s4715_s22, %s5593_s22   ;;  %s4637_s21 = sphi %s4713_s21, %s5592_s21   ;;  %s4633_s20 = sphi %s4711_s20, %s5591_s20   ;;  %s4629_s19 = sphi %s4709_s19, %s5590_s19   ;;  %s4625_s18 = sphi %s4707_s18, %s5589_s18   ;;  %s4621_s17 = sphi %s4705_s17, %s5588_s17   ;;  %s4617_s16 = sphi %s4703_s16, %s5587_s16   ;;  %s4613_s15 = sphi %s4701_s15, %s5586_s15  }
  0x13   : > { %5557 = sst [smem:[#allocation13_spill]] %s4649_s24  ;;  %s42_s30 = sadd.s32 1, %s4661_s27 }
  0x14   : > { %5558 = sst [smem:[#allocation14_spill]] %s4653_s25  ;;  %p36_p0 = scmp.ge.s32.totalorder %s35_s29, 2 }
  0x15   : > { %s51_s5 = sadd.s32 1, %s4645_s23  ;;  %p58_p1 = scmp.ne.s32.totalorder %s4645_s23, %s4641_s22 }
  0x16   : > { %p59_p2 = scmp.eq.s32.totalorder %s4665_s28, 0  ;;  %s5600_s29 = smov (%p36_p0, %s35_s29), 0 }
  0x17   : > { %5559 = sst [smem:[#allocation15_spill]] %s5600_s29  ;;  %s5602_s30 = smov (!%p36_p0, %s42_s30), %s4661_s27 }
  0x18   : > { %s4782_s6 = ssub.s32 %s4657_s26, %s5600_s29  ;;  %p4786_p3 = por %p59_p2, %p58_p1 }
  0x19   : > { %p44_p4 = scmp.ge.s32.totalorder %s5602_s30, 2  ;;  %p64_p5 = scmp.ne.s32.totalorder %s4641_s22, %s4637_s21 }
  0x1a   : > { %p77_p6 = scmp.eq.s32.totalorder %s4782_s6, 0  ;;  %s159_s8 = sadd.s32 1, %s4621_s17 }
  0x1b   : > { %s5604_s30 = smov (%p44_p4, %s5602_s30), 0  ;;  %p5547_p7 = scmp.lt.s32.totalorder %s4665_s28, 4 }
  0x1c   : > { %5561 = sst [smem:[#allocation16_spill]] %s5604_s30  ;;  %s46_s9 = ssub.s32 %s4661_s27, %s5604_s30 }
  0x1d   : > { %s208_s10 = sand.u32 1, %s4645_s23   ;;  %s48_s11 = sor.u32 %s4782_s6, %s46_s9 }
  0x1e   : > { %p157_p8 = scmp.eq.s32.totalorder %s46_s9, 0  ;;  %p49_p9 = scmp.eq.s32.totalorder %s48_s11, 0 }
  0x1f   : > { %s3284_s14 = sshll.u32 %s208_s10, 9  ;;  %s3504_s29 = sshll.u32 %s4661_s27, 8 }
  0x20   : > { %s4802_s12 = scalar_select %p157_p8, %s4621_s17, %s159_s8  }
  0x21   : > { %s4805_s13 = scalar_select %p49_p9, %s4645_s23, %s51_s5  }
  0x22   : > { %s218_s4 = sadd.s32 %s4657_s26, %s3504_s29  ;;  %s212_s3 = scalar_lea.vmem [#allocation3], %s3284_s14 }
  0x23   : > { %s3287_s25 = sshll.u32 %s218_s4, 6  ;;  %s221_s2 = sshll.u32 %s212_s3, 4  ;;  %s222_s2 = int_to_ptr.vmem [resolvable:$true] %s221_s2 }
  0x24   : > { %s5562_s0 = sld [smem:[#allocation17_spill]]  ;;  %p4816_p10 = pnand %p5547_p7, %p4786_p3 }
  0x25   : > { %p3291_p11 = scmp.ge.s32.totalorder %s4665_s28, 1  ;;  %s209_s5 = scalar_lea.sflag [#allocation4], %s208_s10 }
  0x26   : > { %p4463_p12 = pneg %p4816_p10  ;;  %s4474_s29 = scalar_lea.vmem %s222_s2, 8192 }
  0x27   : > { %p4475_p13 = scmp.ne.s32.totalorder %s222_s2, %s4474_s29  ;;  %s4667_s3 = smov [#allocation3]  }
  0x28   : > { %s4479_s4 = sshll.u32 %s4667_s3, 4  ;;  %s4480_s4 = int_to_ptr.vmem [resolvable:$false] %s4479_s4 }
  0x29   : > { %p4477_p0 = pnand %p4475_p13, %p4463_p12  ;;  %s4481_s1 = scalar_lea.vmem %s4480_s4, 16384 }
  0x2a   : > { %s220_s15 = scalar_lea.hbm %s5562_s0, %s3287_s25  ;;  %p4482_p4 = scmp.lt.s32.totalorder %s222_s2, %s4480_s4 }
  0x2b   : > { %p4478_p1 = pneg %p4477_p0  ;;  %p4483_p8 = scmp.lt.s32.totalorder %s4481_s1, %s4474_s29 }
  0x2d   : > { %p4484_p9 = por %p4483_p8, %p4482_p4 }
  0x2f   : > { %p4485_p3 = pnand %p4484_p9, %p4478_p1 }
  0x31   : > { %4488 = shalt.err (!%p4485_p3)
}
  0x32   : > { %s4668_s24 = smov 128   ;;  %s5548_s25 = smov 64  }
  0x33   : > { %s5549_s7 = smov 4   ;;  %s5564_s8 = sld [smem:[#allocation12_spill]] }
  0x34   : > { %4259 = dma.hbm_to_vmem [thread:$0]  (!%p4816_p10), %s220_s15, 8192, %s222_s2, %s209_s5, %s4668_s24, %s5548_s25, %s5549_s7  }
  0x35   : > { %p251_p12 = scmp.lt.s32.totalorder %s4665_s28, 5  ;;  %s3278_s11 = sadd.s32 4294967295, %s4665_s28  }
  0x36   : > { %s3279_s14 = sadd.s32 4294967294, %s4665_s28   ;;  %p65_p0 = scmp.eq.s32.totalorder %s3278_s11, 0 }
  0x37   : > { %p4830_p13 = pnand %p3291_p11, %p251_p12  ;;  %s79_s29 = sadd.s32 1, %s4633_s20 }
  0x38   : > { %s4840_s3 = scalar_select %p77_p6, %s4633_s20, %s79_s29  }
  0x39   : > { %p4845_p1 = por %p65_p0, %p64_p5  ;;  %p86_p10 = scmp.ne.s32.totalorder %s4633_s20, %s4629_s19 }
  0x3a   : > { %p92_p11 = scmp.ne.s32.totalorder %s4629_s19, %s4625_s18  ;;  %p169_p4 = scmp.ne.s32.totalorder %s4621_s17, %s4617_s16 }
  0x3b   : > { %p88_p8 = por %p86_p10, %p59_p2  ;;  %p170_p9 = scmp.eq.s32.totalorder %s3278_s11, 3 }
  0x3c   : > { %p4857_p3 = por %p92_p11, %p65_p0  ;;  %p175_p12 = scmp.ne.s32.totalorder %s4617_s16, %s5564_s8 }
  0x3d   : > { %p4863_p7 = por %p170_p9, %p169_p4  ;;  %p176_p6 = scmp.eq.s32.totalorder %s3279_s14, 3 }
  0x3e   : > { %s231_s21 = sand.u32 1, %s4633_s20   ;;  %s3505_s6 = sshll.u32 %s4657_s26, 10 }
  0x3f   : > { %p4869_p5 = por %p176_p6, %p175_p12  ;;  %s3288_s18 = sshll.u32 %s231_s21, 6 }
  0x40   : > { %s5570_s24 = sld [smem:[#allocation18_spill]]  ;;  %p5571_p2 = scmp.lt.s32.totalorder %s4665_s28, 4 }
  0x41   : > { %s235_s8 = scalar_lea.vmem [#allocation6], %s3288_s18  ;;  %s232_s14 = scalar_lea.sflag [#allocation7], %s231_s21 }
  0x42   : > { %p4878_p0 = pnand %p5571_p2, %p88_p8  ;;  %s243_s25 = sshll.u32 %s235_s8, 4  ;;  %s244_s25 = int_to_ptr.vmem [resolvable:$true] %s243_s25 }
  0x43   : > { %s4502_s7 = scalar_lea.vmem %s244_s25, 1024  ;;  %s4671_s0 = smov [#allocation6]  }
  0x44   : > { %p4491_p10 = pneg %p4878_p0  ;;  %p4503_p11 = scmp.ne.s32.totalorder %s244_s25, %s4502_s7 }
  0x45   : > { %s4507_s30 = sshll.u32 %s4671_s0, 4  ;;  %s4508_s30 = int_to_ptr.vmem [resolvable:$false] %s4507_s30 }
  0x46   : > { %s242_s11 = scalar_lea.hbm %s5570_s24, %s3505_s6  ;;  %p4505_p4 = pnand %p4503_p11, %p4491_p10 }
  0x47   : > { %s4509_s6 = scalar_lea.vmem %s4508_s30, 2048  ;;  %p4510_p12 = scmp.lt.s32.totalorder %s244_s25, %s4508_s30 }
  0x48   : > { %p4506_p9 = pneg %p4505_p4  ;;  %p4511_p8 = scmp.lt.s32.totalorder %s4509_s6, %s4502_s7 }
  0x4a   : > { %p4512_p6 = por %p4511_p8, %p4510_p12 }
  0x4c   : > { %p4513_p2 = pnand %p4512_p6, %p4506_p9 }
  0x4e   : > { %4516 = shalt.err (!%p4513_p2)
}
  0x4f   : > { %s5573_s18 = smov 4   ;;  %s5574_s4 = smov 64  }
  0x50   : > { %4262 = dma.hbm_to_vmem [thread:$0]  (!%p4878_p0), %s242_s11, 1024, %s244_s25, %s232_s14, %s5574_s4, %s5574_s4, %s5573_s18  }
  0x51   : > { %255 = sbr.rel (%p4830_p13) target bundleno = 668 (0x29c), region = 36  ;;  %s257_s21 = sand.u32 (!%p4830_p13), 1, %s4641_s22  }
  0x52   : > { %s3292_s0 = sshll.u32 (!%p4830_p13), %s257_s21, 9  ;;  %s258_s1 = scalar_lea.sflag (!%p4830_p13), [#allocation4], %s257_s21 }
  0x53   : > { %s4892_s24 = scalar_lea.vmem (!%p4830_p13), [#allocation3], %s3292_s0 }
  0x56   : > { %4600 = dma.done.wait (%p4845_p1), %s258_s1, 8192  }
  0x57   : > { %4602 = vsyncadd (%p4845_p1), %s258_s1, 4294959104  ;;  %s266_s30 = sand.u32 1, %s4629_s19  }
  0x58   : > { %s3293_s7 = sshll.u32 %s266_s30, 6  ;;  %s267_s25 = scalar_lea.sflag [#allocation7], %s266_s30 }
  0x59   : > { %s4899_s11 = scalar_lea.vmem [#allocation6], %s3293_s7 }
  0x5a   : > { %4604 = dma.done.wait (%p4857_p3), %s267_s25, 1024  }
  0x5b   : > { %4606 = vsyncadd (%p4857_p3), %s267_s25, 4294966272  ;;  %s303_s10 = sand.u32 1, %s4617_s16   ;;  %s5575_s9 = sld [smem:[#allocation13_spill]] }
  0x5c   : > { %s3294_s29 = sshll.u32 %s303_s10, 9 }
  0x5d   : > { %s4908_s8 = scalar_lea.vmem [#allocation8], %s3294_s29 }
  0x61   : > { %p3295_p13 = scmp.ne.s32.totalorder %s5575_s9, 0 }
  0x63   : > { %319 = sbr.rel (%p3295_p13) target bundleno = 169 (0xa9), region = 48 }
  0x68   : > { %v4672_v0 = vmov 0.0  }
  0x69   : > { %320 = vst [vmem:[#allocation2 + $0x2b0] sm:$0xff] %v4672_v0  ;;  %321 = vst [vmem:[#allocation2 + $0x3b0] sm:$0xff] %v4672_v0 }
  0x6a   : > { %322 = vst [vmem:[#allocation2 + $0xd8] sm:$0xff] %v4672_v0  ;;  %323 = vst [vmem:[#allocation2 + $0x18] sm:$0xff] %v4672_v0 }
  0x6b   : > { %324 = vst [vmem:[#allocation2 + $0x50] sm:$0xff] %v4672_v0  ;;  %325 = vst [vmem:[#allocation2 + $0x368] sm:$0xff] %v4672_v0 }
  0x6c   : > { %326 = vst [vmem:[#allocation2 + $0x330] sm:$0xff] %v4672_v0  ;;  %327 = vst [vmem:[#allocation2 + $0x48] sm:$0xff] %v4672_v0 }
  0x6d   : > { %328 = vst [vmem:[#allocation2 + $0x380] sm:$0xff] %v4672_v0  ;;  %329 = vst [vmem:[#allocation2 + $0x110] sm:$0xff] %v4672_v0 }
  0x6e   : > { %330 = vst [vmem:[#allocation2 + $0x118] sm:$0xff] %v4672_v0  ;;  %331 = vst [vmem:[#allocation2 + $0x98] sm:$0xff] %v4672_v0 }
  0x6f   : > { %332 = vst [vmem:[#allocation2 + $0x320] sm:$0xff] %v4672_v0  ;;  %333 = vst [vmem:[#allocation2 + $0x150] sm:$0xff] %v4672_v0 }
  0x70   : > { %334 = vst [vmem:[#allocation2 + $0x108] sm:$0xff] %v4672_v0  ;;  %335 = vst [vmem:[#allocation2 + $0x60] sm:$0xff] %v4672_v0 }
  0x71   : > { %336 = vst [vmem:[#allocation2 + $0x2e0] sm:$0xff] %v4672_v0  ;;  %337 = vst [vmem:[#allocation2 + $0x388] sm:$0xff] %v4672_v0 }
  0x72   : > { %338 = vst [vmem:[#allocation2 + $0x338] sm:$0xff] %v4672_v0  ;;  %339 = vst [vmem:[#allocation2 + $0x340] sm:$0xff] %v4672_v0 }
  0x73   : > { %340 = vst [vmem:[#allocation2 + $0x80] sm:$0xff] %v4672_v0  ;;  %341 = vst [vmem:[#allocation2 + $0x1a8] sm:$0xff] %v4672_v0 }
  0x74   : > { %342 = vst [vmem:[#allocation2 + $0x1b8] sm:$0xff] %v4672_v0  ;;  %343 = vst [vmem:[#allocation2 + $0x168] sm:$0xff] %v4672_v0 }
  0x75   : > { %344 = vst [vmem:[#allocation2 + $0x3e8] sm:$0xff] %v4672_v0  ;;  %345 = vst [vmem:[#allocation2 + $0x2f8] sm:$0xff] %v4672_v0 }
  0x76   : > { %346 = vst [vmem:[#allocation2 + $0x290] sm:$0xff] %v4672_v0  ;;  %347 = vst [vmem:[#allocation2 + $0x28] sm:$0xff] %v4672_v0 }
  0x77   : > { %348 = vst [vmem:[#allocation2 + $0x138] sm:$0xff] %v4672_v0  ;;  %349 = vst [vmem:[#allocation2 + $0xc0] sm:$0xff] %v4672_v0 }
  0x78   : > { %350 = vst [vmem:[#allocation2 + $0x1c0] sm:$0xff] %v4672_v0  ;;  %351 = vst [vmem:[#allocation2 + $0x280] sm:$0xff] %v4672_v0 }
  0x79   : > { %352 = vst [vmem:[#allocation2 + $0x100] sm:$0xff] %v4672_v0  ;;  %353 = vst [vmem:[#allocation2 + $0x3c0] sm:$0xff] %v4672_v0 }
  0x7a   : > { %354 = vst [vmem:[#allocation2 + $0x158] sm:$0xff] %v4672_v0  ;;  %355 = vst [vmem:[#allocation2 + $0x3e0] sm:$0xff] %v4672_v0 }
  0x7b   : > { %356 = vst [vmem:[#allocation2 + $0x218] sm:$0xff] %v4672_v0  ;;  %357 = vst [vmem:[#allocation2 + $0x3f8] sm:$0xff] %v4672_v0 }
  0x7c   : > { %358 = vst [vmem:[#allocation2 + $0x8] sm:$0xff] %v4672_v0  ;;  %359 = vst [vmem:[#allocation2 + $0x128] sm:$0xff] %v4672_v0 }
  0x7d   : > { %360 = vst [vmem:[#allocation2 + $0x2a0] sm:$0xff] %v4672_v0  ;;  %361 = vst [vmem:[#allocation2 + $0x3f0] sm:$0xff] %v4672_v0 }
  0x7e   : > { %362 = vst [vmem:[#allocation2 + $0xa0] sm:$0xff] %v4672_v0  ;;  %363 = vst [vmem:[#allocation2 + $0x2c0] sm:$0xff] %v4672_v0 }
  0x7f   : > { %364 = vst [vmem:[#allocation2 + $0xb0] sm:$0xff] %v4672_v0  ;;  %365 = vst [vmem:[#allocation2 + $0x1e0] sm:$0xff] %v4672_v0 }
  0x80   : > { %366 = vst [vmem:[#allocation2 + $0x1f0] sm:$0xff] %v4672_v0  ;;  %367 = vst [vmem:[#allocation2 + $0x10] sm:$0xff] %v4672_v0 }
  0x81   : > { %368 = vst [vmem:[#allocation2 + $0x230] sm:$0xff] %v4672_v0  ;;  %369 = vst [vmem:[#allocation2 + $0x240] sm:$0xff] %v4672_v0 }
  0x82   : > { %370 = vst [vmem:[#allocation2 + $0x90] sm:$0xff] %v4672_v0  ;;  %371 = vst [vmem:[#allocation2 + $0x3a0] sm:$0xff] %v4672_v0 }
  0x83   : > { %372 = vst [vmem:[#allocation2 + $0x208] sm:$0xff] %v4672_v0  ;;  %373 = vst [vmem:[#allocation2 + $0xd0] sm:$0xff] %v4672_v0 }
  0x84   : > { %374 = vst [vmem:[#allocation2 + $0x88] sm:$0xff] %v4672_v0  ;;  %375 = vst [vmem:[#allocation2 + $0x2f0] sm:$0xff] %v4672_v0 }
  0x85   : > { %376 = vst [vmem:[#allocation2 + $0x358] sm:$0xff] %v4672_v0  ;;  %377 = vst [vmem:[#allocation2 + $0x268] sm:$0xff] %v4672_v0 }
  0x86   : > { %378 = vst [vmem:[#allocation2 + $0x350] sm:$0xff] %v4672_v0  ;;  %379 = vst [vmem:[#allocation2 + $0x188] sm:$0xff] %v4672_v0 }
  0x87   : > { %380 = vst [vmem:[#allocation2 + $0x1d8] sm:$0xff] %v4672_v0  ;;  %381 = vst [vmem:[#allocation2 + $0x30] sm:$0xff] %v4672_v0 }
  0x88   : > { %382 = vst [vmem:[#allocation2 + $0x140] sm:$0xff] %v4672_v0  ;;  %383 = vst [vmem:[#allocation2 + $0x2a8] sm:$0xff] %v4672_v0 }
  0x89   : > { %384 = vst [vmem:[#allocation2 + $0x130] sm:$0xff] %v4672_v0  ;;  %385 = vst [vmem:[#allocation2 + $0x200] sm:$0xff] %v4672_v0 }
  0x8a   : > { %386 = vst [vmem:[#allocation2 + $0x318] sm:$0xff] %v4672_v0  ;;  %387 = vst [vmem:[#allocation2 + $0x220] sm:$0xff] %v4672_v0 }
  0x8b   : > { %388 = vst [vmem:[#allocation2 + $0x70] sm:$0xff] %v4672_v0  ;;  %389 = vst [vmem:[#allocation2 + $0x300] sm:$0xff] %v4672_v0 }
  0x8c   : > { %390 = vst [vmem:[#allocation2 + $0xe0] sm:$0xff] %v4672_v0  ;;  %391 = vst [vmem:[#allocation2 + $0x178] sm:$0xff] %v4672_v0 }
  0x8d   : > { %392 = vst [vmem:[#allocation2 + $0x328] sm:$0xff] %v4672_v0  ;;  %393 = vst [vmem:[#allocation2 + $0x260] sm:$0xff] %v4672_v0 }
  0x8e   : > { %394 = vst [vmem:[#allocation2 + $0x3b8] sm:$0xff] %v4672_v0  ;;  %395 = vst [vmem:[#allocation2 + $0x2b8] sm:$0xff] %v4672_v0 }
  0x8f   : > { %396 = vst [vmem:[#allocation2 + $0x248] sm:$0xff] %v4672_v0  ;;  %397 = vst [vmem:[#allocation2 + $0x40] sm:$0xff] %v4672_v0 }
  0x90   : > { %398 = vst [vmem:[#allocation2 + $0x20] sm:$0xff] %v4672_v0  ;;  %399 = vst [vmem:[#allocation2 + $0xe8] sm:$0xff] %v4672_v0 }
  0x91   : > { %400 = vst [vmem:[#allocation2 + $0x288] sm:$0xff] %v4672_v0  ;;  %401 = vst [vmem:[#allocation2 + $0x3a8] sm:$0xff] %v4672_v0 }
  0x92   : > { %402 = vst [vmem:[#allocation2 + $0x3c8] sm:$0xff] %v4672_v0  ;;  %403 = vst [vmem:[#allocation2 + $0x160] sm:$0xff] %v4672_v0 }
  0x93   : > { %404 = vst [vmem:[#allocation2 + $0x2c8] sm:$0xff] %v4672_v0  ;;  %405 = vst [vmem:[#allocation2 + $0x210] sm:$0xff] %v4672_v0 }
  0x94   : > { %406 = vst [vmem:[#allocation2 + $0x3d8] sm:$0xff] %v4672_v0  ;;  %407 = vst [vmem:[#allocation2 + $0x1e8] sm:$0xff] %v4672_v0 }
  0x95   : > { %408 = vst [vmem:[#allocation2 + $0x1b0] sm:$0xff] %v4672_v0  ;;  %409 = vst [vmem:[#allocation2 + $0x1c8] sm:$0xff] %v4672_v0 }
  0x96   : > { %410 = vst [vmem:[#allocation2 + $0x2d0] sm:$0xff] %v4672_v0  ;;  %411 = vst [vmem:[#allocation2 + $0x1d0] sm:$0xff] %v4672_v0 }
  0x97   : > { %412 = vst [vmem:[#allocation2 + $0x58] sm:$0xff] %v4672_v0  ;;  %413 = vst [vmem:[#allocation2 + $0x120] sm:$0xff] %v4672_v0 }
  0x98   : > { %414 = vst [vmem:[#allocation2 + $0x198] sm:$0xff] %v4672_v0  ;;  %415 = vst [vmem:[#allocation2 + $0x2e8] sm:$0xff] %v4672_v0 }
  0x99   : > { %416 = vst [vmem:[#allocation2 + $0x1f8] sm:$0xff] %v4672_v0  ;;  %417 = vst [vmem:[#allocation2 + $0x238] sm:$0xff] %v4672_v0 }
  0x9a   : > { %418 = vst [vmem:[#allocation2 + $0x398] sm:$0xff] %v4672_v0  ;;  %419 = vst [vmem:[#allocation2 + $0x390] sm:$0xff] %v4672_v0 }
  0x9b   : > { %420 = vst [vmem:[#allocation2 + $0x1a0] sm:$0xff] %v4672_v0  ;;  %421 = vst [vmem:[#allocation2 + $0xa8] sm:$0xff] %v4672_v0 }
  0x9c   : > { %422 = vst [vmem:[#allocation2 + $0x258] sm:$0xff] %v4672_v0  ;;  %423 = vst [vmem:[#allocation2 + $0x2d8] sm:$0xff] %v4672_v0 }
  0x9d   : > { %424 = vst [vmem:[#allocation2 + $0xf0] sm:$0xff] %v4672_v0  ;;  %425 = vst [vmem:[#allocation2 + $0x180] sm:$0xff] %v4672_v0 }
  0x9e   : > { %426 = vst [vmem:[#allocation2 + $0x170] sm:$0xff] %v4672_v0  ;;  %427 = vst [vmem:[#allocation2 + $0x3d0] sm:$0xff] %v4672_v0 }
  0x9f   : > { %428 = vst [vmem:[#allocation2 + $0x250] sm:$0xff] %v4672_v0  ;;  %429 = vst [vmem:[#allocation2 + $0x378] sm:$0xff] %v4672_v0 }
  0xa0   : > { %430 = vst [vmem:[#allocation2 + $0xb8] sm:$0xff] %v4672_v0  ;;  %431 = vst [vmem:[#allocation2 + $0x38] sm:$0xff] %v4672_v0 }
  0xa1   : > { %432 = vst [vmem:[#allocation2 + $0x78] sm:$0xff] %v4672_v0  ;;  %433 = vst [vmem:[#allocation2 + $0x308] sm:$0xff] %v4672_v0 }
  0xa2   : > { %434 = vst [vmem:[#allocation2 + $0x370] sm:$0xff] %v4672_v0  ;;  %435 = vst [vmem:[#allocation2 + $0xc8] sm:$0xff] %v4672_v0 }
  0xa3   : > { %436 = vst [vmem:[#allocation2 + $0x278] sm:$0xff] %v4672_v0  ;;  %437 = vst [vmem:[#allocation2 + $0x360] sm:$0xff] %v4672_v0 }
  0xa4   : > { %438 = vst [vmem:[#allocation2 + $0x228] sm:$0xff] %v4672_v0  ;;  %439 = vst [vmem:[#allocation2 + $0x348] sm:$0xff] %v4672_v0 }
  0xa5   : > { %440 = vst [vmem:[#allocation2 + $0x148] sm:$0xff] %v4672_v0  ;;  %441 = vst [vmem:[#allocation2 + $0xf8] sm:$0xff] %v4672_v0 }
  0xa6   : > { %442 = vst [vmem:[#allocation2 + $0x68] sm:$0xff] %v4672_v0  ;;  %443 = vst [vmem:[#allocation2] sm:$0xff] %v4672_v0 }
  0xa7   : > { %444 = vst [vmem:[#allocation2 + $0x298] sm:$0xff] %v4672_v0  ;;  %445 = vst [vmem:[#allocation2 + $0x270] sm:$0xff] %v4672_v0 }
  0xa8   : > { %446 = vst [vmem:[#allocation2 + $0x310] sm:$0xff] %v4672_v0  ;;  %447 = vst [vmem:[#allocation2 + $0x190] sm:$0xff] %v4672_v0 }
  0xa9 PF: > { %v4387_v1 = vld [vmem:[%s4899_s11 + $0x38] sm:$0xff]   ;;  %v4388_v2 = vld [vmem:[%s4899_s11 + $0x30] sm:$0xff]   ;;  %v4389_v3 = vld [vmem:[%s4899_s11 + $0x28] sm:$0xff]   ;;  %s5576_s2 = sld [smem:[#allocation13_spill]] }
  0xaa   : > { %4090 = vmatprep.subr.bf16.mxu0 %v4387_v1  ;;  %4234 = vmatprep.subr.bf16.mxu1 %v4387_v1  ;;  %v4390_v4 = vld [vmem:[%s4899_s11 + $0x20] sm:$0xff]   ;;  %v4391_v7 = vld [vmem:[%s4899_s11 + $0x18] sm:$0xff]   ;;  %v4392_v8 = vld [vmem:[%s4899_s11 + $0x10] sm:$0xff]  }
  0xab   : > { %4091 = vmatpush3.bf16.msra.mxu0 %v4387_v1  ;;  %4242 = vmatpush3.bf16.msra.mxu1 %v4387_v1  ;;  %v4395_v5 = vld [vmem:[%s4892_s24] sm:$0xff]   ;;  %v4393_v9 = vld [vmem:[%s4899_s11 + $0x8] sm:$0xff]   ;;  %v4399_v13 = vld [vmem:[%s4892_s24 + $0x10] sm:$0xff]  }
  0xac   : > { %4092 = vmatprep.subr.bf16.mxu0 %v4388_v2  ;;  %4235 = vmatprep.subr.bf16.mxu1 %v4388_v2  ;;  %v4396_v6 = vld [vmem:[%s4892_s24 + $0x100] sm:$0xff]   ;;  %v4397_v11 = vld [vmem:[%s4892_s24 + $0x8] sm:$0xff]   ;;  %v4400_v14 = vld [vmem:[%s4892_s24 + $0x110] sm:$0xff]  }
  0xad   : > { %4106 = vmatprep.mubr.bf16.mxu0 %v4395_v5  ;;  %4170 = vmatprep.mubr.bf16.mxu1 %v4396_v6  ;;  %v4394_v10 = vld [vmem:[%s4899_s11] sm:$0xff]   ;;  %v4398_v12 = vld [vmem:[%s4892_s24 + $0x108] sm:$0xff]   ;;  %v4401_v15 = vld [vmem:[%s4892_s24 + $0x18] sm:$0xff]  }
  0xae   : > { %v4402_v16 = vld [vmem:[%s4892_s24 + $0x118] sm:$0xff]   ;;  %v4403_v17 = vld [vmem:[%s4892_s24 + $0x20] sm:$0xff]   ;;  %v4405_v19 = vld [vmem:[%s4892_s24 + $0x28] sm:$0xff]  }
  0xaf   : > { %4093 = vmatpush3.bf16.msra.mxu0 %v4388_v2  ;;  %4243 = vmatpush3.bf16.msra.mxu1 %v4388_v2  ;;  %v4404_v18 = vld [vmem:[%s4892_s24 + $0x120] sm:$0xff]   ;;  %v4406_v20 = vld [vmem:[%s4892_s24 + $0x128] sm:$0xff]   ;;  %v4407_v21 = vld [vmem:[%s4892_s24 + $0x30] sm:$0xff]   ;;  %p3368_p1 = scmp.ne.s32.totalorder %s5576_s2, 1 }
  0xb0   : > { %4094 = vmatprep.subr.bf16.mxu0 %v4389_v3  ;;  %4236 = vmatprep.subr.bf16.mxu1 %v4389_v3  ;;  %v4408_v22 = vld [vmem:[%s4892_s24 + $0x130] sm:$0xff]   ;;  %v4409_v23 = vld [vmem:[%s4892_s24 + $0x38] sm:$0xff]   ;;  %v4411_v25 = vld [vmem:[%s4892_s24 + $0x40] sm:$0xff]   ;;  %s5577_s18 = sld [smem:[#allocation19_spill]] (!%p3368_p1) }
  0xb1   : > { %v4410_v24 = vld [vmem:[%s4892_s24 + $0x138] sm:$0xff]   ;;  %v4412_v26 = vld [vmem:[%s4892_s24 + $0x140] sm:$0xff]   ;;  %v4413_v27 = vld [vmem:[%s4892_s24 + $0x48] sm:$0xff]   ;;  %s5579_s1 = sld [smem:[#allocation20_spill]] (!%p3368_p1) }
  0xb2   : > { %v4414_v28 = vld [vmem:[%s4892_s24 + $0x148] sm:$0xff]   ;;  %v4415_v29 = vld [vmem:[%s4892_s24 + $0x50] sm:$0xff]   ;;  %v4417_v31 = vld [vmem:[%s4892_s24 + $0x58] sm:$0xff]  }
  0xb3   : > { %4095 = vmatpush3.bf16.msra.mxu0 %v4389_v3  ;;  %4244 = vmatpush3.bf16.msra.mxu1 %v4389_v3  ;;  %v4416_v30 = vld [vmem:[%s4892_s24 + $0x150] sm:$0xff]   ;;  %v4418_v32 = vld [vmem:[%s4892_s24 + $0x158] sm:$0xff]   ;;  %v4419_v33 = vld [vmem:[%s4892_s24 + $0x60] sm:$0xff]  }
  0xb4   : > { %4096 = vmatprep.subr.bf16.mxu0 %v4390_v4  ;;  %4237 = vmatprep.subr.bf16.mxu1 %v4390_v4  ;;  %v4420_v34 = vld [vmem:[%s4892_s24 + $0x160] sm:$0xff]   ;;  %v4421_v35 = vld [vmem:[%s4892_s24 + $0x68] sm:$0xff]   ;;  %v4423_v37 = vld [vmem:[%s4892_s24 + $0x70] sm:$0xff]  }
  0xb5   : > { %v4422_v36 = vld [vmem:[%s4892_s24 + $0x168] sm:$0xff]   ;;  %v4424_v38 = vld [vmem:[%s4892_s24 + $0x170] sm:$0xff]   ;;  %v4425_v39 = vld [vmem:[%s4892_s24 + $0x78] sm:$0xff]  }
  0xb6   : > { %v4426_v40 = vld [vmem:[%s4892_s24 + $0x178] sm:$0xff]   ;;  %v4427_v41 = vld [vmem:[%s4892_s24 + $0x80] sm:$0xff]   ;;  %v4429_v43 = vld [vmem:[%s4892_s24 + $0x88] sm:$0xff]   ;;  %s5578_s4 = smov (!%p3368_p1), %s5577_s18 }
  0xb7   : > { %4097 = vmatpush3.bf16.msra.mxu0 %v4390_v4  ;;  %4245 = vmatpush3.bf16.msra.mxu1 %v4390_v4  ;;  %v4428_v42 = vld [vmem:[%s4892_s24 + $0x180] sm:$0xff]   ;;  %v4430_v44 = vld [vmem:[%s4892_s24 + $0x188] sm:$0xff]   ;;  %v4431_v45 = vld [vmem:[%s4892_s24 + $0x90] sm:$0xff]  }
  0xb8   : > { %4098 = vmatprep.subr.bf16.mxu0 %v4391_v7  ;;  %4238 = vmatprep.subr.bf16.mxu1 %v4391_v7  ;;  %v4432_v46 = vld [vmem:[%s4892_s24 + $0x190] sm:$0xff]   ;;  %v4433_v47 = vld [vmem:[%s4892_s24 + $0x98] sm:$0xff]   ;;  %v4435_v49 = vld [vmem:[%s4892_s24 + $0xa0] sm:$0xff]  }
  0xb9   : > { %v4434_v48 = vld [vmem:[%s4892_s24 + $0x198] sm:$0xff]   ;;  %v4436_v50 = vld [vmem:[%s4892_s24 + $0x1a0] sm:$0xff]   ;;  %v4437_v51 = vld [vmem:[%s4892_s24 + $0xa8] sm:$0xff]  }
  0xba   : > { %v4438_v52 = vld [vmem:[%s4892_s24 + $0x1a8] sm:$0xff]   ;;  %v4439_v53 = vld [vmem:[%s4892_s24 + $0xb0] sm:$0xff]   ;;  %v4441_v55 = vld [vmem:[%s4892_s24 + $0xb8] sm:$0xff]  }
  0xbb   : > { %4099 = vmatpush3.bf16.msra.mxu0 %v4391_v7  ;;  %4246 = vmatpush3.bf16.msra.mxu1 %v4391_v7  ;;  %v4440_v54 = vld [vmem:[%s4892_s24 + $0x1b0] sm:$0xff]   ;;  %v4442_v56 = vld [vmem:[%s4892_s24 + $0x1b8] sm:$0xff]   ;;  %v4443_v57 = vld [vmem:[%s4892_s24 + $0xc0] sm:$0xff]  }
  0xbc   : > { %4100 = vmatprep.subr.bf16.mxu0 %v4392_v8  ;;  %4239 = vmatprep.subr.bf16.mxu1 %v4392_v8  ;;  %v4444_v58 = vld [vmem:[%s4892_s24 + $0x1c0] sm:$0xff]   ;;  %v4445_v59 = vld [vmem:[%s4892_s24 + $0xc8] sm:$0xff]   ;;  %v4447_v61 = vld [vmem:[%s4892_s24 + $0xd0] sm:$0xff]  }
  0xbd   : > { %v4446_v60 = vld [vmem:[%s4892_s24 + $0x1c8] sm:$0xff]   ;;  %v4448_v62 = vld [vmem:[%s4892_s24 + $0x1d0] sm:$0xff]   ;;  %v4449_v63 = vld [vmem:[%s4892_s24 + $0xd8] sm:$0xff]  }
  0xbe   : > { %v4450_v0 = vld [vmem:[%s4892_s24 + $0x1d8] sm:$0xff]   ;;  %v4451_v1 = vld [vmem:[%s4892_s24 + $0xe0] sm:$0xff]   ;;  %v4453_v3 = vld [vmem:[%s4892_s24 + $0xe8] sm:$0xff]  }
  0xbf   : > { %4101 = vmatpush3.bf16.msra.mxu0 %v4392_v8  ;;  %4247 = vmatpush3.bf16.msra.mxu1 %v4392_v8  ;;  %v4452_v2 = vld [vmem:[%s4892_s24 + $0x1e0] sm:$0xff]   ;;  %v4454_v4 = vld [vmem:[%s4892_s24 + $0x1e8] sm:$0xff]   ;;  %v4455_v5 = vld [vmem:[%s4892_s24 + $0xf0] sm:$0xff]  }
  0xc0   : > { %4102 = vmatprep.subr.bf16.mxu0 %v4393_v9  ;;  %4240 = vmatprep.subr.bf16.mxu1 %v4393_v9  ;;  %v4456_v6 = vld [vmem:[%s4892_s24 + $0x1f0] sm:$0xff]   ;;  %v4457_v7 = vld [vmem:[%s4892_s24 + $0xf8] sm:$0xff]  }
  0xc1   : > { %v4458_v8 = vld [vmem:[%s4892_s24 + $0x1f8] sm:$0xff]  }
  0xc3   : > { %4103 = vmatpush3.bf16.msra.mxu0 %v4393_v9  ;;  %4248 = vmatpush3.bf16.msra.mxu1 %v4393_v9  ;;  %v578_v9 = vld [vmem:[#allocation2 + $0xd8] sm:$0xff] }
  0xc4   : > { %4104 = vmatprep.subr.bf16.mxu0 %v4394_v10  ;;  %4241 = vmatprep.subr.bf16.mxu1 %v4394_v10 }
  0xc7   : > { %4105 = vmatpush3.bf16.msra.mxu0 %v4394_v10  ;;  %4249 = vmatpush3.bf16.msra.mxu1 %v4394_v10  ;;  %v642_v10 = vld [vmem:[#allocation2 + $0x318] sm:$0xff] }
  0xca   : > { %4107 = vmatmul.mubr.bf16.vlgmr.msra.gmra.mxu0 %v4397_v11  ;;  %4171 = vmatmul.mubr.bf16.vlgmr.msra.gmra.mxu1 %v4398_v12 }
  0xcb   : > { %4110 = vmatprep.mubr.bf16.mxu0 %v4399_v13  ;;  %4174 = vmatprep.mubr.bf16.mxu1 %v4400_v14  ;;  %v576_v13 = vld [vmem:[#allocation2 + $0x2b0] sm:$0xff] }
  0xcc   : > { %v640_v14 = vld [vmem:[#allocation2 + $0x130] sm:$0xff] }
  0xd2   : > { %4111 = vmatmul.mubr.bf16.gmra.mxu0 %v4401_v15  ;;  %4175 = vmatmul.mubr.bf16.gmra.mxu1 %v4402_v16 }
  0xd3   : > { %4114 = vmatprep.mubr.bf16.mxu0 %v4403_v17  ;;  %4178 = vmatprep.mubr.bf16.mxu1 %v4404_v18 }
  0xda   : > { %4115 = vmatmul.mubr.bf16.gmra.mxu0 %v4405_v19  ;;  %4179 = vmatmul.mubr.bf16.gmra.mxu1 %v4406_v20  ;;  %v579_v19 = vld [vmem:[#allocation2 + $0x18] sm:$0xff]  ;;  %v643_v20 = vld [vmem:[#allocation2 + $0x220] sm:$0xff] }
  0xdb   : > { %4118 = vmatprep.mubr.bf16.mxu0 %v4407_v21  ;;  %4182 = vmatprep.mubr.bf16.mxu1 %v4408_v22 }
  0xe2   : > { %4119 = vmatmul.mubr.bf16.gmra.mxu0 %v4409_v23  ;;  %4183 = vmatmul.mubr.bf16.gmra.mxu1 %v4410_v24 }
  0xe3   : > { %4122 = vmatprep.mubr.bf16.mxu0 %v4411_v25  ;;  %4186 = vmatprep.mubr.bf16.mxu1 %v4412_v26  ;;  %v577_v25 = vld [vmem:[#allocation2 + $0x3b0] sm:$0xff]  ;;  %v641_v26 = vld [vmem:[#allocation2 + $0x200] sm:$0xff] }
  0xea   : > { %4123 = vmatmul.mubr.bf16.gmra.mxu0 %v4413_v27  ;;  %4187 = vmatmul.mubr.bf16.gmra.mxu1 %v4414_v28 }
  0xeb   : > { %4126 = vmatprep.mubr.bf16.mxu0 %v4415_v29  ;;  %4190 = vmatprep.mubr.bf16.mxu1 %v4416_v30 }
  0xf2   : > { %4127 = vmatmul.mubr.bf16.gmra.mxu0 %v4417_v31  ;;  %4191 = vmatmul.mubr.bf16.gmra.mxu1 %v4418_v32  ;;  %v582_v31 = vld [vmem:[#allocation2 + $0x330] sm:$0xff]  ;;  %v646_v32 = vld [vmem:[#allocation2 + $0xe0] sm:$0xff] }
  0xf3   : > { %4130 = vmatprep.mubr.bf16.mxu0 %v4419_v33  ;;  %4194 = vmatprep.mubr.bf16.mxu1 %v4420_v34 }
  0xfa   : > { %4131 = vmatmul.mubr.bf16.gmra.mxu0 %v4421_v35  ;;  %4195 = vmatmul.mubr.bf16.gmra.mxu1 %v4422_v36 }
  0xfb   : > { %4134 = vmatprep.mubr.bf16.mxu0 %v4423_v37  ;;  %4198 = vmatprep.mubr.bf16.mxu1 %v4424_v38  ;;  %v580_v37 = vld [vmem:[#allocation2 + $0x50] sm:$0xff] }
  0xfc   : > { %v644_v38 = vld [vmem:[#allocation2 + $0x70] sm:$0xff] }
 0x102   : > { %4135 = vmatmul.mubr.bf16.gmra.mxu0 %v4425_v39  ;;  %4199 = vmatmul.mubr.bf16.gmra.mxu1 %v4426_v40 }
 0x103   : > { %4138 = vmatprep.mubr.bf16.mxu0 %v4427_v41  ;;  %4202 = vmatprep.mubr.bf16.mxu1 %v4428_v42 }
 0x10a   : > { %4139 = vmatmul.mubr.bf16.gmra.mxu0 %v4429_v43  ;;  %4203 = vmatmul.mubr.bf16.gmra.mxu1 %v4430_v44  ;;  %v583_v43 = vld [vmem:[#allocation2 + $0x48] sm:$0xff]  ;;  %v647_v44 = vld [vmem:[#allocation2 + $0x178] sm:$0xff] }
 0x10b   : > { %4142 = vmatprep.mubr.bf16.mxu0 %v4431_v45  ;;  %4206 = vmatprep.mubr.bf16.mxu1 %v4432_v46 }
 0x112   : > { %4143 = vmatmul.mubr.bf16.gmra.mxu0 %v4433_v47  ;;  %4207 = vmatmul.mubr.bf16.gmra.mxu1 %v4434_v48 }
 0x113   : > { %4146 = vmatprep.mubr.bf16.mxu0 %v4435_v49  ;;  %4210 = vmatprep.mubr.bf16.mxu1 %v4436_v50  ;;  %v581_v49 = vld [vmem:[#allocation2 + $0x368] sm:$0xff]  ;;  %v645_v50 = vld [vmem:[#allocation2 + $0x300] sm:$0xff] }
 0x11a   : > { %4147 = vmatmul.mubr.bf16.gmra.mxu0 %v4437_v51  ;;  %4211 = vmatmul.mubr.bf16.gmra.mxu1 %v4438_v52 }
 0x11b   : > { %4150 = vmatprep.mubr.bf16.mxu0 %v4439_v53  ;;  %4214 = vmatprep.mubr.bf16.mxu1 %v4440_v54 }
 0x122   : > { %4151 = vmatmul.mubr.bf16.gmra.mxu0 %v4441_v55  ;;  %4215 = vmatmul.mubr.bf16.gmra.mxu1 %v4442_v56  ;;  %v586_v55 = vld [vmem:[#allocation2 + $0x118] sm:$0xff] }
 0x123   : > { %4154 = vmatprep.mubr.bf16.mxu0 %v4443_v57  ;;  %4218 = vmatprep.mubr.bf16.mxu1 %v4444_v58  ;;  %v650_v56 = vld [vmem:[#allocation2 + $0x3b8] sm:$0xff] }
 0x12a   : > { %4155 = vmatmul.mubr.bf16.gmra.mxu0 %v4445_v59  ;;  %4219 = vmatmul.mubr.bf16.gmra.mxu1 %v4446_v60 }
 0x12b   : > { %4158 = vmatprep.mubr.bf16.mxu0 %v4447_v61  ;;  %4222 = vmatprep.mubr.bf16.mxu1 %v4448_v62  ;;  %v584_v61 = vld [vmem:[#allocation2 + $0x380] sm:$0xff]  ;;  %v648_v62 = vld [vmem:[#allocation2 + $0x328] sm:$0xff] }
 0x132   : > { %4159 = vmatmul.mubr.bf16.gmra.mxu0 %v4449_v63  ;;  %4223 = vmatmul.mubr.bf16.gmra.mxu1 %v4450_v0 }
 0x133   : > { %4162 = vmatprep.mubr.bf16.mxu0 %v4451_v1  ;;  %4226 = vmatprep.mubr.bf16.mxu1 %v4452_v2 }
 0x13a   : > { %4163 = vmatmul.mubr.bf16.gmra.mxu0 %v4453_v3  ;;  %4227 = vmatmul.mubr.bf16.gmra.mxu1 %v4454_v4  ;;  %v587_v3 = vld [vmem:[#allocation2 + $0x98] sm:$0xff] }
 0x13b   : > { %4166 = vmatprep.mubr.bf16.mxu0 %v4455_v5  ;;  %4230 = vmatprep.mubr.bf16.mxu1 %v4456_v6  ;;  %v651_v4 = vld [vmem:[#allocation2 + $0x2b8] sm:$0xff] }
 0x142   : > { %4167 = vmatmul.mubr.bf16.gmra.mxu0 %v4457_v7  ;;  %4231 = vmatmul.mubr.bf16.gmra.mxu1 %v4458_v8 }
 0x18a   : > { %v4108_v11 = vpop.f32.mrf.mxu0  ;;  %v4172_v12 = vpop.f32.mrf.mxu1 }
 0x18b   : > { %v1699_v15 = vadd.f32 %v4108_v11, %v578_v9  ;;  %v1763_v16 = vadd.f32 %v4172_v12, %v642_v10  ;;  %v585_v9 = vld [vmem:[#allocation2 + $0x110] sm:$0xff]  ;;  %v649_v10 = vld [vmem:[#allocation2 + $0x260] sm:$0xff] }
 0x18c   : > { %v1186_v17 = vpop.f32.mrf.mxu0  ;;  %v1442_v18 = vpop.f32.mrf.mxu1 }
 0x18d   : > { %1827 = vst [vmem:[#allocation2 + $0xd8] sm:$0xff] %v1699_v15  ;;  %1891 = vst [vmem:[#allocation2 + $0x318] sm:$0xff] %v1763_v16  ;;  %v1697_v21 = vadd.f32 %v1186_v17, %v576_v13  ;;  %v1761_v22 = vadd.f32 %v1442_v18, %v640_v14  ;;  %v590_v15 = vld [vmem:[#allocation2 + $0x108] sm:$0xff]  ;;  %v654_v16 = vld [vmem:[#allocation2 + $0x20] sm:$0xff] }
 0x18e   : > { %v4109_v23 = vpop.f32.mrf.mxu0  ;;  %v4173_v24 = vpop.f32.mrf.mxu1 }
 0x18f   : > { %1825 = vst [vmem:[#allocation2 + $0x2b0] sm:$0xff] %v1697_v21  ;;  %1889 = vst [vmem:[#allocation2 + $0x130] sm:$0xff] %v1761_v22  ;;  %v1700_v27 = vadd.f32 %v4109_v23, %v579_v19  ;;  %v1764_v28 = vadd.f32 %v4173_v24, %v643_v20  ;;  %v588_v21 = vld [vmem:[#allocation2 + $0x320] sm:$0xff]  ;;  %v652_v22 = vld [vmem:[#allocation2 + $0x248] sm:$0xff] }
 0x190   : > { %v1189_v29 = vpop.f32.mrf.mxu0  ;;  %v1445_v30 = vpop.f32.mrf.mxu1 }
 0x191   : > { %1828 = vst [vmem:[#allocation2 + $0x18] sm:$0xff] %v1700_v27  ;;  %1892 = vst [vmem:[#allocation2 + $0x220] sm:$0xff] %v1764_v28  ;;  %v1698_v33 = vadd.f32 %v1189_v29, %v577_v25  ;;  %v1762_v34 = vadd.f32 %v1445_v30, %v641_v26  ;;  %v591_v27 = vld [vmem:[#allocation2 + $0x60] sm:$0xff]  ;;  %v655_v28 = vld [vmem:[#allocation2 + $0xe8] sm:$0xff] }
 0x192   : > { %v4112_v35 = vpop.f32.mrf.mxu0  ;;  %v4176_v36 = vpop.f32.mrf.mxu1 }
 0x193   : > { %1826 = vst [vmem:[#allocation2 + $0x3b0] sm:$0xff] %v1698_v33  ;;  %1890 = vst [vmem:[#allocation2 + $0x200] sm:$0xff] %v1762_v34  ;;  %v1703_v39 = vadd.f32 %v4112_v35, %v582_v31  ;;  %v1767_v40 = vadd.f32 %v4176_v36, %v646_v32  ;;  %v589_v33 = vld [vmem:[#allocation2 + $0x150] sm:$0xff]  ;;  %v653_v34 = vld [vmem:[#allocation2 + $0x40] sm:$0xff] }
 0x194   : > { %v1202_v41 = vpop.f32.mrf.mxu0  ;;  %v1458_v42 = vpop.f32.mrf.mxu1 }
 0x195   : > { %1831 = vst [vmem:[#allocation2 + $0x330] sm:$0xff] %v1703_v39  ;;  %1895 = vst [vmem:[#allocation2 + $0xe0] sm:$0xff] %v1767_v40  ;;  %v1701_v45 = vadd.f32 %v1202_v41, %v580_v37  ;;  %v1765_v46 = vadd.f32 %v1458_v42, %v644_v38  ;;  %v594_v39 = vld [vmem:[#allocation2 + $0x338] sm:$0xff]  ;;  %v658_v40 = vld [vmem:[#allocation2 + $0x3c8] sm:$0xff] }
 0x196   : > { %v4113_v47 = vpop.f32.mrf.mxu0  ;;  %v4177_v48 = vpop.f32.mrf.mxu1 }
 0x197   : > { %1829 = vst [vmem:[#allocation2 + $0x50] sm:$0xff] %v1701_v45  ;;  %1893 = vst [vmem:[#allocation2 + $0x70] sm:$0xff] %v1765_v46  ;;  %v1704_v51 = vadd.f32 %v4113_v47, %v583_v43  ;;  %v1768_v52 = vadd.f32 %v4177_v48, %v647_v44  ;;  %v592_v45 = vld [vmem:[#allocation2 + $0x2e0] sm:$0xff]  ;;  %v656_v46 = vld [vmem:[#allocation2 + $0x288] sm:$0xff] }
 0x198   : > { %v1205_v53 = vpop.f32.mrf.mxu0  ;;  %v1461_v54 = vpop.f32.mrf.mxu1 }
 0x199   : > { %1832 = vst [vmem:[#allocation2 + $0x48] sm:$0xff] %v1704_v51  ;;  %1896 = vst [vmem:[#allocation2 + $0x178] sm:$0xff] %v1768_v52  ;;  %v1702_v57 = vadd.f32 %v1205_v53, %v581_v49  ;;  %v1766_v58 = vadd.f32 %v1461_v54, %v645_v50  ;;  %v595_v51 = vld [vmem:[#allocation2 + $0x340] sm:$0xff] }
 0x19a   : > { %v4116_v59 = vpop.f32.mrf.mxu0  ;;  %v4180_v60 = vpop.f32.mrf.mxu1  ;;  %v659_v52 = vld [vmem:[#allocation2 + $0x160] sm:$0xff] }
 0x19b   : > { %1830 = vst [vmem:[#allocation2 + $0x368] sm:$0xff] %v1702_v57  ;;  %1894 = vst [vmem:[#allocation2 + $0x300] sm:$0xff] %v1766_v58  ;;  %v1707_v63 = vadd.f32 %v4116_v59, %v586_v55  ;;  %v1771_v0 = vadd.f32 %v4180_v60, %v650_v56  ;;  %v593_v57 = vld [vmem:[#allocation2 + $0x388] sm:$0xff] }
 0x19c   : > { %v1218_v1 = vpop.f32.mrf.mxu0  ;;  %v1474_v2 = vpop.f32.mrf.mxu1  ;;  %v657_v58 = vld [vmem:[#allocation2 + $0x3a8] sm:$0xff] }
 0x19d   : > { %1835 = vst [vmem:[#allocation2 + $0x118] sm:$0xff] %v1707_v63  ;;  %1899 = vst [vmem:[#allocation2 + $0x3b8] sm:$0xff] %v1771_v0  ;;  %v1705_v5 = vadd.f32 %v1218_v1, %v584_v61  ;;  %v1769_v6 = vadd.f32 %v1474_v2, %v648_v62  ;;  %v598_v63 = vld [vmem:[#allocation2 + $0x1b8] sm:$0xff] }
 0x19e   : > { %v4117_v7 = vpop.f32.mrf.mxu0  ;;  %v4181_v8 = vpop.f32.mrf.mxu1  ;;  %v662_v0 = vld [vmem:[#allocation2 + $0x3d8] sm:$0xff] }
 0x19f   : > { %1833 = vst [vmem:[#allocation2 + $0x380] sm:$0xff] %v1705_v5  ;;  %1897 = vst [vmem:[#allocation2 + $0x328] sm:$0xff] %v1769_v6  ;;  %v1708_v11 = vadd.f32 %v4117_v7, %v587_v3  ;;  %v1772_v12 = vadd.f32 %v4181_v8, %v651_v4  ;;  %v596_v5 = vld [vmem:[#allocation2 + $0x80] sm:$0xff]  ;;  %v660_v6 = vld [vmem:[#allocation2 + $0x2c8] sm:$0xff] }
 0x1a0   : > { %v1221_v13 = vpop.f32.mrf.mxu0  ;;  %v1477_v14 = vpop.f32.mrf.mxu1 }
 0x1a1   : > { %1836 = vst [vmem:[#allocation2 + $0x98] sm:$0xff] %v1708_v11  ;;  %1900 = vst [vmem:[#allocation2 + $0x2b8] sm:$0xff] %v1772_v12  ;;  %v1706_v17 = vadd.f32 %v1221_v13, %v585_v9  ;;  %v1770_v18 = vadd.f32 %v1477_v14, %v649_v10  ;;  %v599_v11 = vld [vmem:[#allocation2 + $0x168] sm:$0xff] }
 0x1a2   : > { %v4120_v19 = vpop.f32.mrf.mxu0  ;;  %v4184_v20 = vpop.f32.mrf.mxu1  ;;  %v663_v12 = vld [vmem:[#allocation2 + $0x1e8] sm:$0xff] }
 0x1a3   : > { %1834 = vst [vmem:[#allocation2 + $0x110] sm:$0xff] %v1706_v17  ;;  %1898 = vst [vmem:[#allocation2 + $0x260] sm:$0xff] %v1770_v18  ;;  %v1711_v23 = vadd.f32 %v4120_v19, %v590_v15  ;;  %v1775_v24 = vadd.f32 %v4184_v20, %v654_v16  ;;  %v597_v17 = vld [vmem:[#allocation2 + $0x1a8] sm:$0xff]  ;;  %v661_v18 = vld [vmem:[#allocation2 + $0x210] sm:$0xff] }
 0x1a4   : > { %v1234_v25 = vpop.f32.mrf.mxu0  ;;  %v1490_v26 = vpop.f32.mrf.mxu1 }
 0x1a5   : > { %1839 = vst [vmem:[#allocation2 + $0x108] sm:$0xff] %v1711_v23  ;;  %1903 = vst [vmem:[#allocation2 + $0x20] sm:$0xff] %v1775_v24  ;;  %v1709_v29 = vadd.f32 %v1234_v25, %v588_v21  ;;  %v1773_v30 = vadd.f32 %v1490_v26, %v652_v22  ;;  %v602_v23 = vld [vmem:[#allocation2 + $0x290] sm:$0xff] }
 0x1a6   : > { %v4121_v31 = vpop.f32.mrf.mxu0  ;;  %v4185_v32 = vpop.f32.mrf.mxu1  ;;  %v666_v24 = vld [vmem:[#allocation2 + $0x2d0] sm:$0xff] }
 0x1a7   : > { %1837 = vst [vmem:[#allocation2 + $0x320] sm:$0xff] %v1709_v29  ;;  %1901 = vst [vmem:[#allocation2 + $0x248] sm:$0xff] %v1773_v30  ;;  %v1712_v35 = vadd.f32 %v4121_v31, %v591_v27  ;;  %v1776_v36 = vadd.f32 %v4185_v32, %v655_v28  ;;  %v600_v29 = vld [vmem:[#allocation2 + $0x3e8] sm:$0xff]  ;;  %v664_v30 = vld [vmem:[#allocation2 + $0x1b0] sm:$0xff] }
 0x1a8   : > { %v1237_v37 = vpop.f32.mrf.mxu0  ;;  %v1493_v38 = vpop.f32.mrf.mxu1 }
 0x1a9   : > { %1840 = vst [vmem:[#allocation2 + $0x60] sm:$0xff] %v1712_v35  ;;  %1904 = vst [vmem:[#allocation2 + $0xe8] sm:$0xff] %v1776_v36  ;;  %v1710_v41 = vadd.f32 %v1237_v37, %v589_v33  ;;  %v1774_v42 = vadd.f32 %v1493_v38, %v653_v34  ;;  %v603_v35 = vld [vmem:[#allocation2 + $0x28] sm:$0xff]  ;;  %v667_v36 = vld [vmem:[#allocation2 + $0x1d0] sm:$0xff] }
 0x1aa   : > { %v4124_v43 = vpop.f32.mrf.mxu0  ;;  %v4188_v44 = vpop.f32.mrf.mxu1 }
 0x1ab   : > { %1838 = vst [vmem:[#allocation2 + $0x150] sm:$0xff] %v1710_v41  ;;  %1902 = vst [vmem:[#allocation2 + $0x40] sm:$0xff] %v1774_v42  ;;  %v1715_v47 = vadd.f32 %v4124_v43, %v594_v39  ;;  %v1779_v48 = vadd.f32 %v4188_v44, %v658_v40  ;;  %v601_v41 = vld [vmem:[#allocation2 + $0x2f8] sm:$0xff]  ;;  %v665_v42 = vld [vmem:[#allocation2 + $0x1c8] sm:$0xff] }
 0x1ac   : > { %v1250_v49 = vpop.f32.mrf.mxu0  ;;  %v1506_v50 = vpop.f32.mrf.mxu1 }
 0x1ad   : > { %1843 = vst [vmem:[#allocation2 + $0x338] sm:$0xff] %v1715_v47  ;;  %1907 = vst [vmem:[#allocation2 + $0x3c8] sm:$0xff] %v1779_v48  ;;  %v1713_v53 = vadd.f32 %v1250_v49, %v592_v45  ;;  %v1777_v54 = vadd.f32 %v1506_v50, %v656_v46  ;;  %v606_v47 = vld [vmem:[#allocation2 + $0x1c0] sm:$0xff]  ;;  %v670_v48 = vld [vmem:[#allocation2 + $0x198] sm:$0xff] }
 0x1ae   : > { %v4125_v55 = vpop.f32.mrf.mxu0  ;;  %v4189_v56 = vpop.f32.mrf.mxu1 }
 0x1af   : > { %1841 = vst [vmem:[#allocation2 + $0x2e0] sm:$0xff] %v1713_v53  ;;  %1905 = vst [vmem:[#allocation2 + $0x288] sm:$0xff] %v1777_v54  ;;  %v1716_v59 = vadd.f32 %v4125_v55, %v595_v51  ;;  %v1780_v60 = vadd.f32 %v4189_v56, %v659_v52  ;;  %v604_v53 = vld [vmem:[#allocation2 + $0x138] sm:$0xff] }
 0x1b0   : > { %v1253_v61 = vpop.f32.mrf.mxu0  ;;  %v1509_v62 = vpop.f32.mrf.mxu1  ;;  %v668_v54 = vld [vmem:[#allocation2 + $0x58] sm:$0xff] }
 0x1b1   : > { %1844 = vst [vmem:[#allocation2 + $0x340] sm:$0xff] %v1716_v59  ;;  %1908 = vst [vmem:[#allocation2 + $0x160] sm:$0xff] %v1780_v60  ;;  %v1714_v1 = vadd.f32 %v1253_v61, %v593_v57  ;;  %v1778_v2 = vadd.f32 %v1509_v62, %v657_v58  ;;  %v607_v59 = vld [vmem:[#allocation2 + $0x280] sm:$0xff]  ;;  %v671_v60 = vld [vmem:[#allocation2 + $0x2e8] sm:$0xff] }
 0x1b2   : > { %v4128_v3 = vpop.f32.mrf.mxu0  ;;  %v4192_v4 = vpop.f32.mrf.mxu1 }
 0x1b3   : > { %1842 = vst [vmem:[#allocation2 + $0x388] sm:$0xff] %v1714_v1  ;;  %1906 = vst [vmem:[#allocation2 + $0x3a8] sm:$0xff] %v1778_v2  ;;  %v1719_v7 = vadd.f32 %v4128_v3, %v598_v63  ;;  %v1783_v8 = vadd.f32 %v4192_v4, %v662_v0  ;;  %v605_v1 = vld [vmem:[#allocation2 + $0xc0] sm:$0xff] }
 0x1b4   : > { %v1266_v9 = vpop.f32.mrf.mxu0  ;;  %v1522_v10 = vpop.f32.mrf.mxu1  ;;  %v669_v2 = vld [vmem:[#allocation2 + $0x120] sm:$0xff] }
 0x1b5   : > { %1847 = vst [vmem:[#allocation2 + $0x1b8] sm:$0xff] %v1719_v7  ;;  %1911 = vst [vmem:[#allocation2 + $0x3d8] sm:$0xff] %v1783_v8  ;;  %v1717_v13 = vadd.f32 %v1266_v9, %v596_v5  ;;  %v1781_v14 = vadd.f32 %v1522_v10, %v660_v6  ;;  %v610_v7 = vld [vmem:[#allocation2 + $0x158] sm:$0xff] }
 0x1b6   : > { %v4129_v15 = vpop.f32.mrf.mxu0  ;;  %v4193_v16 = vpop.f32.mrf.mxu1  ;;  %v674_v8 = vld [vmem:[#allocation2 + $0x398] sm:$0xff] }
 0x1b7   : > { %1845 = vst [vmem:[#allocation2 + $0x80] sm:$0xff] %v1717_v13  ;;  %1909 = vst [vmem:[#allocation2 + $0x2c8] sm:$0xff] %v1781_v14  ;;  %v1720_v19 = vadd.f32 %v4129_v15, %v599_v11  ;;  %v1784_v20 = vadd.f32 %v4193_v16, %v663_v12  ;;  %v608_v13 = vld [vmem:[#allocation2 + $0x100] sm:$0xff]  ;;  %v672_v14 = vld [vmem:[#allocation2 + $0x1f8] sm:$0xff] }
 0x1b8   : > { %v1269_v21 = vpop.f32.mrf.mxu0  ;;  %v1525_v22 = vpop.f32.mrf.mxu1 }
 0x1b9   : > { %1848 = vst [vmem:[#allocation2 + $0x168] sm:$0xff] %v1720_v19  ;;  %1912 = vst [vmem:[#allocation2 + $0x1e8] sm:$0xff] %v1784_v20  ;;  %v1718_v25 = vadd.f32 %v1269_v21, %v597_v17  ;;  %v1782_v26 = vadd.f32 %v1525_v22, %v661_v18  ;;  %v611_v19 = vld [vmem:[#allocation2 + $0x3e0] sm:$0xff]  ;;  %v675_v20 = vld [vmem:[#allocation2 + $0x390] sm:$0xff] }
 0x1ba   : > { %v4132_v27 = vpop.f32.mrf.mxu0  ;;  %v4196_v28 = vpop.f32.mrf.mxu1 }
 0x1bb   : > { %1846 = vst [vmem:[#allocation2 + $0x1a8] sm:$0xff] %v1718_v25  ;;  %1910 = vst [vmem:[#allocation2 + $0x210] sm:$0xff] %v1782_v26  ;;  %v1723_v31 = vadd.f32 %v4132_v27, %v602_v23  ;;  %v1787_v32 = vadd.f32 %v4196_v28, %v666_v24  ;;  %v609_v25 = vld [vmem:[#allocation2 + $0x3c0] sm:$0xff]  ;;  %v673_v26 = vld [vmem:[#allocation2 + $0x238] sm:$0xff] }
 0x1bc   : > { %v1282_v33 = vpop.f32.mrf.mxu0  ;;  %v1538_v34 = vpop.f32.mrf.mxu1 }
 0x1bd   : > { %1851 = vst [vmem:[#allocation2 + $0x290] sm:$0xff] %v1723_v31  ;;  %1915 = vst [vmem:[#allocation2 + $0x2d0] sm:$0xff] %v1787_v32  ;;  %v1721_v37 = vadd.f32 %v1282_v33, %v600_v29  ;;  %v1785_v38 = vadd.f32 %v1538_v34, %v664_v30  ;;  %v614_v31 = vld [vmem:[#allocation2 + $0x8] sm:$0xff]  ;;  %v678_v32 = vld [vmem:[#allocation2 + $0x258] sm:$0xff] }
 0x1be   : > { %v4133_v39 = vpop.f32.mrf.mxu0  ;;  %v4197_v40 = vpop.f32.mrf.mxu1 }
 0x1bf   : > { %1849 = vst [vmem:[#allocation2 + $0x3e8] sm:$0xff] %v1721_v37  ;;  %1913 = vst [vmem:[#allocation2 + $0x1b0] sm:$0xff] %v1785_v38  ;;  %v1724_v43 = vadd.f32 %v4133_v39, %v603_v35  ;;  %v1788_v44 = vadd.f32 %v4197_v40, %v667_v36  ;;  %v612_v37 = vld [vmem:[#allocation2 + $0x218] sm:$0xff]  ;;  %v676_v38 = vld [vmem:[#allocation2 + $0x1a0] sm:$0xff] }
 0x1c0   : > { %v1285_v45 = vpop.f32.mrf.mxu0  ;;  %v1541_v46 = vpop.f32.mrf.mxu1 }
 0x1c1   : > { %1852 = vst [vmem:[#allocation2 + $0x28] sm:$0xff] %v1724_v43  ;;  %1916 = vst [vmem:[#allocation2 + $0x1d0] sm:$0xff] %v1788_v44  ;;  %v1722_v49 = vadd.f32 %v1285_v45, %v601_v41  ;;  %v1786_v50 = vadd.f32 %v1541_v46, %v665_v42  ;;  %v615_v43 = vld [vmem:[#allocation2 + $0x128] sm:$0xff]  ;;  %v679_v44 = vld [vmem:[#allocation2 + $0x2d8] sm:$0xff] }
 0x1c2   : > { %v4136_v51 = vpop.f32.mrf.mxu0  ;;  %v4200_v52 = vpop.f32.mrf.mxu1 }
 0x1c3   : > { %1850 = vst [vmem:[#allocation2 + $0x2f8] sm:$0xff] %v1722_v49  ;;  %1914 = vst [vmem:[#allocation2 + $0x1c8] sm:$0xff] %v1786_v50  ;;  %v1727_v55 = vadd.f32 %v4136_v51, %v606_v47  ;;  %v1791_v56 = vadd.f32 %v4200_v52, %v670_v48  ;;  %v613_v49 = vld [vmem:[#allocation2 + $0x3f8] sm:$0xff]  ;;  %v677_v50 = vld [vmem:[#allocation2 + $0xa8] sm:$0xff] }
 0x1c4   : > { %v1298_v57 = vpop.f32.mrf.mxu0  ;;  %v1554_v58 = vpop.f32.mrf.mxu1 }
 0x1c5   : > { %1855 = vst [vmem:[#allocation2 + $0x1c0] sm:$0xff] %v1727_v55  ;;  %1919 = vst [vmem:[#allocation2 + $0x198] sm:$0xff] %v1791_v56  ;;  %v1725_v61 = vadd.f32 %v1298_v57, %v604_v53  ;;  %v1789_v62 = vadd.f32 %v1554_v58, %v668_v54  ;;  %v618_v55 = vld [vmem:[#allocation2 + $0xa0] sm:$0xff]  ;;  %v682_v56 = vld [vmem:[#allocation2 + $0x170] sm:$0xff] }
 0x1c6   : > { %v4137_v63 = vpop.f32.mrf.mxu0  ;;  %v4201_v0 = vpop.f32.mrf.mxu1 }
 0x1c7   : > { %1853 = vst [vmem:[#allocation2 + $0x138] sm:$0xff] %v1725_v61  ;;  %1917 = vst [vmem:[#allocation2 + $0x58] sm:$0xff] %v1789_v62  ;;  %v1728_v3 = vadd.f32 %v4137_v63, %v607_v59  ;;  %v1792_v4 = vadd.f32 %v4201_v0, %v671_v60  ;;  %v616_v61 = vld [vmem:[#allocation2 + $0x2a0] sm:$0xff]  ;;  %v680_v62 = vld [vmem:[#allocation2 + $0xf0] sm:$0xff] }
 0x1c8   : > { %v1301_v5 = vpop.f32.mrf.mxu0  ;;  %v1557_v6 = vpop.f32.mrf.mxu1 }
 0x1c9   : > { %1856 = vst [vmem:[#allocation2 + $0x280] sm:$0xff] %v1728_v3  ;;  %1920 = vst [vmem:[#allocation2 + $0x2e8] sm:$0xff] %v1792_v4  ;;  %v1726_v9 = vadd.f32 %v1301_v5, %v605_v1  ;;  %v1790_v10 = vadd.f32 %v1557_v6, %v669_v2  ;;  %v619_v3 = vld [vmem:[#allocation2 + $0x2c0] sm:$0xff]  ;;  %v683_v4 = vld [vmem:[#allocation2 + $0x3d0] sm:$0xff] }
 0x1ca   : > { %v4140_v11 = vpop.f32.mrf.mxu0  ;;  %v4204_v12 = vpop.f32.mrf.mxu1 }
 0x1cb   : > { %1854 = vst [vmem:[#allocation2 + $0xc0] sm:$0xff] %v1726_v9  ;;  %1918 = vst [vmem:[#allocation2 + $0x120] sm:$0xff] %v1790_v10  ;;  %v1731_v15 = vadd.f32 %v4140_v11, %v610_v7  ;;  %v1795_v16 = vadd.f32 %v4204_v12, %v674_v8  ;;  %v617_v9 = vld [vmem:[#allocation2 + $0x3f0] sm:$0xff]  ;;  %v681_v10 = vld [vmem:[#allocation2 + $0x180] sm:$0xff] }
 0x1cc   : > { %v1314_v17 = vpop.f32.mrf.mxu0  ;;  %v1570_v18 = vpop.f32.mrf.mxu1 }
 0x1cd   : > { %1859 = vst [vmem:[#allocation2 + $0x158] sm:$0xff] %v1731_v15  ;;  %1923 = vst [vmem:[#allocation2 + $0x398] sm:$0xff] %v1795_v16  ;;  %v1729_v21 = vadd.f32 %v1314_v17, %v608_v13  ;;  %v1793_v22 = vadd.f32 %v1570_v18, %v672_v14  ;;  %v622_v15 = vld [vmem:[#allocation2 + $0x1f0] sm:$0xff]  ;;  %v686_v16 = vld [vmem:[#allocation2 + $0xb8] sm:$0xff] }
 0x1ce   : > { %v4141_v23 = vpop.f32.mrf.mxu0  ;;  %v4205_v24 = vpop.f32.mrf.mxu1 }
 0x1cf   : > { %1857 = vst [vmem:[#allocation2 + $0x100] sm:$0xff] %v1729_v21  ;;  %1921 = vst [vmem:[#allocation2 + $0x1f8] sm:$0xff] %v1793_v22  ;;  %v1732_v27 = vadd.f32 %v4141_v23, %v611_v19  ;;  %v1796_v28 = vadd.f32 %v4205_v24, %v675_v20  ;;  %v620_v21 = vld [vmem:[#allocation2 + $0xb0] sm:$0xff] }
 0x1d0   : > { %v1317_v29 = vpop.f32.mrf.mxu0  ;;  %v1573_v30 = vpop.f32.mrf.mxu1  ;;  %v684_v22 = vld [vmem:[#allocation2 + $0x250] sm:$0xff] }
 0x1d1   : > { %1860 = vst [vmem:[#allocation2 + $0x3e0] sm:$0xff] %v1732_v27  ;;  %1924 = vst [vmem:[#allocation2 + $0x390] sm:$0xff] %v1796_v28  ;;  %v1730_v33 = vadd.f32 %v1317_v29, %v609_v25  ;;  %v1794_v34 = vadd.f32 %v1573_v30, %v673_v26  ;;  %v623_v27 = vld [vmem:[#allocation2 + $0x10] sm:$0xff]  ;;  %v687_v28 = vld [vmem:[#allocation2 + $0x38] sm:$0xff] }
 0x1d2   : > { %v4144_v35 = vpop.f32.mrf.mxu0  ;;  %v4208_v36 = vpop.f32.mrf.mxu1 }
 0x1d3   : > { %1858 = vst [vmem:[#allocation2 + $0x3c0] sm:$0xff] %v1730_v33  ;;  %1922 = vst [vmem:[#allocation2 + $0x238] sm:$0xff] %v1794_v34  ;;  %v1735_v39 = vadd.f32 %v4144_v35, %v614_v31  ;;  %v1799_v40 = vadd.f32 %v4208_v36, %v678_v32  ;;  %v621_v33 = vld [vmem:[#allocation2 + $0x1e0] sm:$0xff]  ;;  %v685_v34 = vld [vmem:[#allocation2 + $0x378] sm:$0xff] }
 0x1d4   : > { %v1330_v41 = vpop.f32.mrf.mxu0  ;;  %v1586_v42 = vpop.f32.mrf.mxu1 }
 0x1d5   : > { %1863 = vst [vmem:[#allocation2 + $0x8] sm:$0xff] %v1735_v39  ;;  %1927 = vst [vmem:[#allocation2 + $0x258] sm:$0xff] %v1799_v40  ;;  %v1733_v45 = vadd.f32 %v1330_v41, %v612_v37  ;;  %v1797_v46 = vadd.f32 %v1586_v42, %v676_v38  ;;  %v626_v39 = vld [vmem:[#allocation2 + $0x90] sm:$0xff] }
 0x1d6   : > { %v4145_v47 = vpop.f32.mrf.mxu0  ;;  %v4209_v48 = vpop.f32.mrf.mxu1  ;;  %v690_v40 = vld [vmem:[#allocation2 + $0x370] sm:$0xff] }
 0x1d7   : > { %1861 = vst [vmem:[#allocation2 + $0x218] sm:$0xff] %v1733_v45  ;;  %1925 = vst [vmem:[#allocation2 + $0x1a0] sm:$0xff] %v1797_v46  ;;  %v1736_v51 = vadd.f32 %v4145_v47, %v615_v43  ;;  %v1800_v52 = vadd.f32 %v4209_v48, %v679_v44  ;;  %v624_v45 = vld [vmem:[#allocation2 + $0x230] sm:$0xff]  ;;  %v688_v46 = vld [vmem:[#allocation2 + $0x78] sm:$0xff] }
 0x1d8   : > { %v1333_v53 = vpop.f32.mrf.mxu0  ;;  %v1589_v54 = vpop.f32.mrf.mxu1 }
 0x1d9   : > { %1864 = vst [vmem:[#allocation2 + $0x128] sm:$0xff] %v1736_v51  ;;  %1928 = vst [vmem:[#allocation2 + $0x2d8] sm:$0xff] %v1800_v52  ;;  %v1734_v57 = vadd.f32 %v1333_v53, %v613_v49  ;;  %v1798_v58 = vadd.f32 %v1589_v54, %v677_v50  ;;  %v627_v51 = vld [vmem:[#allocation2 + $0x3a0] sm:$0xff]  ;;  %v691_v52 = vld [vmem:[#allocation2 + $0xc8] sm:$0xff] }
 0x1da   : > { %v4148_v59 = vpop.f32.mrf.mxu0  ;;  %v4212_v60 = vpop.f32.mrf.mxu1 }
 0x1db   : > { %1862 = vst [vmem:[#allocation2 + $0x3f8] sm:$0xff] %v1734_v57  ;;  %1926 = vst [vmem:[#allocation2 + $0xa8] sm:$0xff] %v1798_v58  ;;  %v1739_v63 = vadd.f32 %v4148_v59, %v618_v55  ;;  %v1803_v0 = vadd.f32 %v4212_v60, %v682_v56  ;;  %v625_v57 = vld [vmem:[#allocation2 + $0x240] sm:$0xff]  ;;  %v689_v58 = vld [vmem:[#allocation2 + $0x308] sm:$0xff] }
 0x1dc   : > { %v1346_v1 = vpop.f32.mrf.mxu0  ;;  %v1602_v2 = vpop.f32.mrf.mxu1 }
 0x1dd   : > { %1867 = vst [vmem:[#allocation2 + $0xa0] sm:$0xff] %v1739_v63  ;;  %1931 = vst [vmem:[#allocation2 + $0x170] sm:$0xff] %v1803_v0  ;;  %v1737_v5 = vadd.f32 %v1346_v1, %v616_v61  ;;  %v1801_v6 = vadd.f32 %v1602_v2, %v680_v62  ;;  %v630_v63 = vld [vmem:[#allocation2 + $0x88] sm:$0xff] }
 0x1de   : > { %v4149_v7 = vpop.f32.mrf.mxu0  ;;  %v4213_v8 = vpop.f32.mrf.mxu1  ;;  %v694_v0 = vld [vmem:[#allocation2 + $0x228] sm:$0xff] }
 0x1df   : > { %1865 = vst [vmem:[#allocation2 + $0x2a0] sm:$0xff] %v1737_v5  ;;  %1929 = vst [vmem:[#allocation2 + $0xf0] sm:$0xff] %v1801_v6  ;;  %v1740_v11 = vadd.f32 %v4149_v7, %v619_v3  ;;  %v1804_v12 = vadd.f32 %v4213_v8, %v683_v4  ;;  %v628_v5 = vld [vmem:[#allocation2 + $0x208] sm:$0xff]  ;;  %v692_v6 = vld [vmem:[#allocation2 + $0x278] sm:$0xff] }
 0x1e0   : > { %v1349_v13 = vpop.f32.mrf.mxu0  ;;  %v1605_v14 = vpop.f32.mrf.mxu1 }
 0x1e1   : > { %1868 = vst [vmem:[#allocation2 + $0x2c0] sm:$0xff] %v1740_v11  ;;  %1932 = vst [vmem:[#allocation2 + $0x3d0] sm:$0xff] %v1804_v12  ;;  %v1738_v17 = vadd.f32 %v1349_v13, %v617_v9  ;;  %v1802_v18 = vadd.f32 %v1605_v14, %v681_v10  ;;  %v631_v11 = vld [vmem:[#allocation2 + $0x2f0] sm:$0xff]  ;;  %v695_v12 = vld [vmem:[#allocation2 + $0x348] sm:$0xff] }
 0x1e2   : > { %v4152_v19 = vpop.f32.mrf.mxu0  ;;  %v4216_v20 = vpop.f32.mrf.mxu1 }
 0x1e3   : > { %1866 = vst [vmem:[#allocation2 + $0x3f0] sm:$0xff] %v1738_v17  ;;  %1930 = vst [vmem:[#allocation2 + $0x180] sm:$0xff] %v1802_v18  ;;  %v1743_v23 = vadd.f32 %v4152_v19, %v622_v15  ;;  %v1807_v24 = vadd.f32 %v4216_v20, %v686_v16  ;;  %v629_v17 = vld [vmem:[#allocation2 + $0xd0] sm:$0xff]  ;;  %v693_v18 = vld [vmem:[#allocation2 + $0x360] sm:$0xff] }
 0x1e4   : > { %v1362_v25 = vpop.f32.mrf.mxu0  ;;  %v1618_v26 = vpop.f32.mrf.mxu1 }
 0x1e5   : > { %1871 = vst [vmem:[#allocation2 + $0x1f0] sm:$0xff] %v1743_v23  ;;  %1935 = vst [vmem:[#allocation2 + $0xb8] sm:$0xff] %v1807_v24  ;;  %v1741_v29 = vadd.f32 %v1362_v25, %v620_v21  ;;  %v1805_v30 = vadd.f32 %v1618_v26, %v684_v22  ;;  %v634_v23 = vld [vmem:[#allocation2 + $0x350] sm:$0xff]  ;;  %v698_v24 = vld [vmem:[#allocation2 + $0x68] sm:$0xff] }
 0x1e6   : > { %v4153_v31 = vpop.f32.mrf.mxu0  ;;  %v4217_v32 = vpop.f32.mrf.mxu1 }
 0x1e7   : > { %1869 = vst [vmem:[#allocation2 + $0xb0] sm:$0xff] %v1741_v29  ;;  %1933 = vst [vmem:[#allocation2 + $0x250] sm:$0xff] %v1805_v30  ;;  %v1744_v35 = vadd.f32 %v4153_v31, %v623_v27  ;;  %v1808_v36 = vadd.f32 %v4217_v32, %v687_v28  ;;  %v632_v29 = vld [vmem:[#allocation2 + $0x358] sm:$0xff]  ;;  %v696_v30 = vld [vmem:[#allocation2 + $0x148] sm:$0xff] }
 0x1e8   : > { %v1365_v37 = vpop.f32.mrf.mxu0  ;;  %v1621_v38 = vpop.f32.mrf.mxu1 }
 0x1e9   : > { %1872 = vst [vmem:[#allocation2 + $0x10] sm:$0xff] %v1744_v35  ;;  %1936 = vst [vmem:[#allocation2 + $0x38] sm:$0xff] %v1808_v36  ;;  %v1742_v41 = vadd.f32 %v1365_v37, %v621_v33  ;;  %v1806_v42 = vadd.f32 %v1621_v38, %v685_v34  ;;  %v635_v35 = vld [vmem:[#allocation2 + $0x188] sm:$0xff]  ;;  %v699_v36 = vld [vmem:[#allocation2] sm:$0xff] }
 0x1ea   : > { %v4156_v43 = vpop.f32.mrf.mxu0  ;;  %v4220_v44 = vpop.f32.mrf.mxu1 }
 0x1eb   : > { %1870 = vst [vmem:[#allocation2 + $0x1e0] sm:$0xff] %v1742_v41  ;;  %1934 = vst [vmem:[#allocation2 + $0x378] sm:$0xff] %v1806_v42  ;;  %v1747_v47 = vadd.f32 %v4156_v43, %v626_v39  ;;  %v1811_v48 = vadd.f32 %v4220_v44, %v690_v40  ;;  %v633_v41 = vld [vmem:[#allocation2 + $0x268] sm:$0xff]  ;;  %v697_v42 = vld [vmem:[#allocation2 + $0xf8] sm:$0xff] }
 0x1ec   : > { %v1378_v49 = vpop.f32.mrf.mxu0  ;;  %v1634_v50 = vpop.f32.mrf.mxu1 }
 0x1ed   : > { %1875 = vst [vmem:[#allocation2 + $0x90] sm:$0xff] %v1747_v47  ;;  %1939 = vst [vmem:[#allocation2 + $0x370] sm:$0xff] %v1811_v48  ;;  %v1745_v53 = vadd.f32 %v1378_v49, %v624_v45  ;;  %v1809_v54 = vadd.f32 %v1634_v50, %v688_v46  ;;  %v638_v47 = vld [vmem:[#allocation2 + $0x140] sm:$0xff]  ;;  %v702_v48 = vld [vmem:[#allocation2 + $0x310] sm:$0xff] }
 0x1ee   : > { %v4157_v55 = vpop.f32.mrf.mxu0  ;;  %v4221_v56 = vpop.f32.mrf.mxu1 }
 0x1ef   : > { %1873 = vst [vmem:[#allocation2 + $0x230] sm:$0xff] %v1745_v53  ;;  %1937 = vst [vmem:[#allocation2 + $0x78] sm:$0xff] %v1809_v54  ;;  %v1748_v59 = vadd.f32 %v4157_v55, %v627_v51  ;;  %v1812_v60 = vadd.f32 %v4221_v56, %v691_v52  ;;  %v636_v53 = vld [vmem:[#allocation2 + $0x1d8] sm:$0xff] }
 0x1f0   : > { %v1381_v61 = vpop.f32.mrf.mxu0  ;;  %v1637_v62 = vpop.f32.mrf.mxu1  ;;  %v700_v54 = vld [vmem:[#allocation2 + $0x298] sm:$0xff] }
 0x1f1   : > { %1876 = vst [vmem:[#allocation2 + $0x3a0] sm:$0xff] %v1748_v59  ;;  %1940 = vst [vmem:[#allocation2 + $0xc8] sm:$0xff] %v1812_v60  ;;  %v1746_v1 = vadd.f32 %v1381_v61, %v625_v57  ;;  %v1810_v2 = vadd.f32 %v1637_v62, %v689_v58  ;;  %v639_v59 = vld [vmem:[#allocation2 + $0x2a8] sm:$0xff]  ;;  %v703_v60 = vld [vmem:[#allocation2 + $0x190] sm:$0xff] }
 0x1f2   : > { %v4160_v3 = vpop.f32.mrf.mxu0  ;;  %v4224_v4 = vpop.f32.mrf.mxu1 }
 0x1f3   : > { %1874 = vst [vmem:[#allocation2 + $0x240] sm:$0xff] %v1746_v1  ;;  %1938 = vst [vmem:[#allocation2 + $0x308] sm:$0xff] %v1810_v2  ;;  %v1751_v7 = vadd.f32 %v4160_v3, %v630_v63  ;;  %v1815_v8 = vadd.f32 %v4224_v4, %v694_v0  ;;  %v637_v1 = vld [vmem:[#allocation2 + $0x30] sm:$0xff] }
 0x1f4   : > { %v1394_v9 = vpop.f32.mrf.mxu0  ;;  %v1650_v10 = vpop.f32.mrf.mxu1  ;;  %v701_v2 = vld [vmem:[#allocation2 + $0x270] sm:$0xff] }
 0x1f5   : > { %1879 = vst [vmem:[#allocation2 + $0x88] sm:$0xff] %v1751_v7  ;;  %1943 = vst [vmem:[#allocation2 + $0x228] sm:$0xff] %v1815_v8  ;;  %v1749_v13 = vadd.f32 %v1394_v9, %v628_v5  ;;  %v1813_v14 = vadd.f32 %v1650_v10, %v692_v6 }
 0x1f6   : > { %v4161_v15 = vpop.f32.mrf.mxu0  ;;  %v4225_v16 = vpop.f32.mrf.mxu1 }
 0x1f7   : > { %1877 = vst [vmem:[#allocation2 + $0x208] sm:$0xff] %v1749_v13  ;;  %1941 = vst [vmem:[#allocation2 + $0x278] sm:$0xff] %v1813_v14  ;;  %v1752_v19 = vadd.f32 %v4161_v15, %v631_v11  ;;  %v1816_v20 = vadd.f32 %v4225_v16, %v695_v12 }
 0x1f8   : > { %v1397_v21 = vpop.f32.mrf.mxu0  ;;  %v1653_v22 = vpop.f32.mrf.mxu1 }
 0x1f9   : > { %1880 = vst [vmem:[#allocation2 + $0x2f0] sm:$0xff] %v1752_v19  ;;  %1944 = vst [vmem:[#allocation2 + $0x348] sm:$0xff] %v1816_v20  ;;  %v1750_v25 = vadd.f32 %v1397_v21, %v629_v17  ;;  %v1814_v26 = vadd.f32 %v1653_v22, %v693_v18 }
 0x1fa   : > { %v4164_v27 = vpop.f32.mrf.mxu0  ;;  %v4228_v28 = vpop.f32.mrf.mxu1 }
 0x1fb   : > { %1878 = vst [vmem:[#allocation2 + $0xd0] sm:$0xff] %v1750_v25  ;;  %1942 = vst [vmem:[#allocation2 + $0x360] sm:$0xff] %v1814_v26  ;;  %v1755_v31 = vadd.f32 %v4164_v27, %v634_v23  ;;  %v1819_v32 = vadd.f32 %v4228_v28, %v698_v24 }
 0x1fc   : > { %v1410_v33 = vpop.f32.mrf.mxu0  ;;  %v1666_v34 = vpop.f32.mrf.mxu1 }
 0x1fd   : > { %1883 = vst [vmem:[#allocation2 + $0x350] sm:$0xff] %v1755_v31  ;;  %1947 = vst [vmem:[#allocation2 + $0x68] sm:$0xff] %v1819_v32  ;;  %v1753_v37 = vadd.f32 %v1410_v33, %v632_v29  ;;  %v1817_v38 = vadd.f32 %v1666_v34, %v696_v30 }
 0x1fe   : > { %v4165_v39 = vpop.f32.mrf.mxu0  ;;  %v4229_v40 = vpop.f32.mrf.mxu1 }
 0x1ff   : > { %1881 = vst [vmem:[#allocation2 + $0x358] sm:$0xff] %v1753_v37  ;;  %1945 = vst [vmem:[#allocation2 + $0x148] sm:$0xff] %v1817_v38  ;;  %v1756_v43 = vadd.f32 %v4165_v39, %v635_v35  ;;  %v1820_v44 = vadd.f32 %v4229_v40, %v699_v36 }
 0x200   : > { %v1413_v45 = vpop.f32.mrf.mxu0  ;;  %v1669_v46 = vpop.f32.mrf.mxu1 }
 0x201   : > { %1884 = vst [vmem:[#allocation2 + $0x188] sm:$0xff] %v1756_v43  ;;  %1948 = vst [vmem:[#allocation2] sm:$0xff] %v1820_v44  ;;  %v1754_v49 = vadd.f32 %v1413_v45, %v633_v41  ;;  %v1818_v50 = vadd.f32 %v1669_v46, %v697_v42 }
 0x202   : > { %v4168_v51 = vpop.f32.mrf.mxu0  ;;  %v4232_v52 = vpop.f32.mrf.mxu1 }
 0x203   : > { %1882 = vst [vmem:[#allocation2 + $0x268] sm:$0xff] %v1754_v49  ;;  %1946 = vst [vmem:[#allocation2 + $0xf8] sm:$0xff] %v1818_v50  ;;  %v1759_v55 = vadd.f32 %v4168_v51, %v638_v47  ;;  %v1823_v56 = vadd.f32 %v4232_v52, %v702_v48 }
 0x204   : > { %v1426_v57 = vpop.f32.mrf.mxu0  ;;  %v1682_v58 = vpop.f32.mrf.mxu1 }
 0x205   : > { %1887 = vst [vmem:[#allocation2 + $0x140] sm:$0xff] %v1759_v55  ;;  %1951 = vst [vmem:[#allocation2 + $0x310] sm:$0xff] %v1823_v56  ;;  %v1757_v61 = vadd.f32 %v1426_v57, %v636_v53  ;;  %v1821_v62 = vadd.f32 %v1682_v58, %v700_v54 }
 0x206   : > { %v4169_v63 = vpop.f32.mrf.mxu0  ;;  %v4233_v0 = vpop.f32.mrf.mxu1 }
 0x207   : > { %1885 = vst [vmem:[#allocation2 + $0x1d8] sm:$0xff] %v1757_v61  ;;  %1949 = vst [vmem:[#allocation2 + $0x298] sm:$0xff] %v1821_v62  ;;  %v1760_v3 = vadd.f32 %v4169_v63, %v639_v59  ;;  %v1824_v4 = vadd.f32 %v4233_v0, %v703_v60  ;;  %1956 = sbr.rel (%p3368_p1) target bundleno = 643 (0x283), region = 52 }
 0x208   : > { %v1429_v5 = vpop.f32.mrf.mxu0  ;;  %v1685_v6 = vpop.f32.mrf.mxu1 }
 0x209   : > { %1888 = vst [vmem:[#allocation2 + $0x2a8] sm:$0xff] %v1760_v3  ;;  %1952 = vst [vmem:[#allocation2 + $0x190] sm:$0xff] %v1824_v4  ;;  %v1758_v7 = vadd.f32 %v1429_v5, %v637_v1  ;;  %v1822_v8 = vadd.f32 %v1685_v6, %v701_v2 }
 0x20b   : > { %1886 = vst [vmem:[#allocation2 + $0x30] sm:$0xff] %v1758_v7  ;;  %1950 = vst [vmem:[#allocation2 + $0x270] sm:$0xff] %v1822_v8 }
 0x20c   : > { %v1957_v9 = vld [vmem:[#allocation2 + $0x2b0] sm:$0xff]  ;;  %v5115_v11 = vld [vmem:[%s5577_s18] ss:$0 sm:$0xff]  ;;  %v1959_v15 = vld [vmem:[#allocation2 + $0xd8] sm:$0xff] }
 0x20d   : > { %v1958_v10 = vld [vmem:[#allocation2 + $0x3b0] sm:$0xff]  ;;  %v2092_v12 = vmul.f32 %v5115_v11, %v1957_v9  ;;  %v5122_v14 = vld [vmem:[%s5579_s1] ss:$0 sm:$0xff]  ;;  %v1960_v16 = vld [vmem:[#allocation2 + $0x18] sm:$0xff]  ;;  %v2094_v17 = vmul.f32 %v5115_v11, %v1959_v15 }
 0x20e   : > { %v2093_v13 = vmul.f32 %v5115_v11, %v1958_v10  ;;  %v2095_v18 = vmul.f32 %v5115_v11, %v1960_v16  ;;  %v1961_v19 = vld [vmem:[#allocation2 + $0x50] sm:$0xff]  ;;  %v1962_v20 = vld [vmem:[#allocation2 + $0x368] sm:$0xff]  ;;  %v1965_v31 = vld [vmem:[#allocation2 + $0x380] sm:$0xff] }
 0x20f   : > { %v1963_v21 = vld [vmem:[#allocation2 + $0x330] sm:$0xff]  ;;  %v2227_v22 = vadd.f32 %v5122_v14, %v2092_v12  ;;  %v2096_v24 = vmul.f32 %v5115_v11, %v1961_v19  ;;  %v2097_v25 = vmul.f32 %v5115_v11, %v1962_v20  ;;  %v1964_v26 = vld [vmem:[#allocation2 + $0x48] sm:$0xff]  ;;  %v2229_v27 = vadd.f32 %v5122_v14, %v2094_v17  ;;  %v1967_v41 = vld [vmem:[#allocation2 + $0x118] sm:$0xff] }
 0x210   : > { %v2228_v23 = vadd.f32 %v5122_v14, %v2093_v13  ;;  %v2230_v28 = vadd.f32 %v5122_v14, %v2095_v18  ;;  %v2098_v29 = vmul.f32 %v5115_v11, %v1963_v21  ;;  %v2099_v30 = vmul.f32 %v5115_v11, %v1964_v26  ;;  %v1966_v36 = vld [vmem:[#allocation2 + $0x110] sm:$0xff]  ;;  %v1968_v42 = vld [vmem:[#allocation2 + $0x98] sm:$0xff]  ;;  %v1969_v47 = vld [vmem:[#allocation2 + $0x320] sm:$0xff] }
 0x211   : > { %v2355_v32 = vmax.f32 %v2227_v22, 0.0  ;;  %v2231_v34 = vadd.f32 %v5122_v14, %v2096_v24  ;;  %v2232_v35 = vadd.f32 %v5122_v14, %v2097_v25  ;;  %v2357_v37 = vmax.f32 %v2229_v27, 0.0  ;;  %v1970_v48 = vld [vmem:[#allocation2 + $0x150] sm:$0xff]  ;;  %v1971_v53 = vld [vmem:[#allocation2 + $0x108] sm:$0xff]  ;;  %v1972_v58 = vld [vmem:[#allocation2 + $0x60] sm:$0xff] }
 0x212   : > { %v2356_v33 = vmax.f32 %v2228_v23, 0.0  ;;  %v2358_v38 = vmax.f32 %v2230_v28, 0.0  ;;  %v2233_v39 = vadd.f32 %v5122_v14, %v2098_v29  ;;  %v2234_v40 = vadd.f32 %v5122_v14, %v2099_v30  ;;  %v1973_v63 = vld [vmem:[#allocation2 + $0x2e0] sm:$0xff]  ;;  %v1974_v8 = vld [vmem:[#allocation2 + $0x388] sm:$0xff]  ;;  %v1975_v15 = vld [vmem:[#allocation2 + $0x338] sm:$0xff] }
 0x213   : > { %v2359_v44 = vmax.f32 %v2231_v34, 0.0  ;;  %v2360_v45 = vmax.f32 %v2232_v35, 0.0  ;;  %v2100_v46 = vmul.f32 %v5115_v11, %v1965_v31  ;;  %v2101_v52 = vmul.f32 %v5115_v11, %v1966_v36  ;;  %v1976_v16 = vld [vmem:[#allocation2 + $0x340] sm:$0xff]  ;;  %v1978_v22 = vld [vmem:[#allocation2 + $0x1a8] sm:$0xff]  ;;  %v1979_v27 = vld [vmem:[#allocation2 + $0x1b8] sm:$0xff] }
 0x214   : > { %v3638_v43 = vpack.c.bf16 %v2356_v33, %v2355_v32  ;;  %v3643_v49 = vpack.c.bf16 %v2358_v38, %v2357_v37  ;;  %v2361_v50 = vmax.f32 %v2233_v39, 0.0  ;;  %v2362_v51 = vmax.f32 %v2234_v40, 0.0  ;;  %v1977_v21 = vld [vmem:[#allocation2 + $0x80] sm:$0xff]  ;;  %v1980_v32 = vld [vmem:[#allocation2 + $0x168] sm:$0xff] }
 0x215   : > { %v3648_v54 = vpack.c.bf16 %v2360_v45, %v2359_v44  ;;  %v2235_v55 = vadd.f32 %v5122_v14, %v2100_v46  ;;  %v2102_v56 = vmul.f32 %v5115_v11, %v1967_v41  ;;  %v2103_v57 = vmul.f32 %v5115_v11, %v1968_v42  ;;  %v1981_v37 = vld [vmem:[#allocation2 + $0x3e8] sm:$0xff]  ;;  %v1982_v46 = vld [vmem:[#allocation2 + $0x2f8] sm:$0xff] }
 0x216   : > { %3639 = vst [vmem:[%s4908_s8] sm:$0xff] %v3638_v43   ;;  %3955 = vst [vmem:[%s4908_s8 + $0x8] sm:$0xff] %v3643_v49   ;;  %v3653_v59 = vpack.c.bf16 %v2362_v51, %v2361_v50  ;;  %v2236_v60 = vadd.f32 %v5122_v14, %v2101_v52  ;;  %v2104_v61 = vmul.f32 %v5115_v11, %v1969_v47  ;;  %v1983_v51 = vld [vmem:[#allocation2 + $0x290] sm:$0xff]  ;;  %v1984_v52 = vld [vmem:[#allocation2 + $0x28] sm:$0xff] }
 0x217   : > { %v2105_v62 = vmul.f32 %v5115_v11, %v1970_v48  ;;  %3956 = vst [vmem:[%s4908_s8 + $0x10] sm:$0xff] %v3648_v54   ;;  %v2363_v0 = vmax.f32 %v2235_v55, 0.0  ;;  %v2237_v1 = vadd.f32 %v5122_v14, %v2102_v56  ;;  %v2238_v2 = vadd.f32 %v5122_v14, %v2103_v57  ;;  %v1985_v57 = vld [vmem:[#allocation2 + $0x138] sm:$0xff] }
 0x218   : > { %v2106_v3 = vmul.f32 %v5115_v11, %v1971_v53  ;;  %3957 = vst [vmem:[%s4908_s8 + $0x18] sm:$0xff] %v3653_v59   ;;  %v2364_v4 = vmax.f32 %v2236_v60, 0.0  ;;  %v2239_v5 = vadd.f32 %v5122_v14, %v2104_v61  ;;  %v2107_v7 = vmul.f32 %v5115_v11, %v1972_v58  ;;  %v1986_v58 = vld [vmem:[#allocation2 + $0xc0] sm:$0xff] }
 0x219   : > { %v2240_v6 = vadd.f32 %v5122_v14, %v2105_v62  ;;  %v2365_v9 = vmax.f32 %v2237_v1, 0.0  ;;  %v2366_v10 = vmax.f32 %v2238_v2, 0.0  ;;  %v2108_v13 = vmul.f32 %v5115_v11, %v1973_v63  ;;  %v1987_v63 = vld [vmem:[#allocation2 + $0x1c0] sm:$0xff] }
 0x21a   : > { %v2241_v12 = vadd.f32 %v5122_v14, %v2106_v3  ;;  %v3658_v17 = vpack.c.bf16 %v2364_v4, %v2363_v0  ;;  %v2367_v18 = vmax.f32 %v2239_v5, 0.0  ;;  %v2242_v20 = vadd.f32 %v5122_v14, %v2107_v7  ;;  %v1988_v4 = vld [vmem:[#allocation2 + $0x280] sm:$0xff] }
 0x21b   : > { %v2368_v19 = vmax.f32 %v2240_v6, 0.0  ;;  %v3663_v23 = vpack.c.bf16 %v2366_v10, %v2365_v9  ;;  %v2109_v25 = vmul.f32 %v5115_v11, %v1974_v8  ;;  %v2243_v26 = vadd.f32 %v5122_v14, %v2108_v13  ;;  %v1989_v9 = vld [vmem:[#allocation2 + $0x100] sm:$0xff] }
 0x21c   : > { %v2369_v24 = vmax.f32 %v2241_v12, 0.0  ;;  %3958 = vst [vmem:[%s4908_s8 + $0x20] sm:$0xff] %v3658_v17   ;;  %v2370_v29 = vmax.f32 %v2242_v20, 0.0  ;;  %v2110_v30 = vmul.f32 %v5115_v11, %v1975_v15  ;;  %v2111_v31 = vmul.f32 %v5115_v11, %v1976_v16  ;;  %v1990_v20 = vld [vmem:[#allocation2 + $0x3c0] sm:$0xff] }
 0x21d   : > { %v3668_v28 = vpack.c.bf16 %v2368_v19, %v2367_v18  ;;  %3959 = vst [vmem:[%s4908_s8 + $0x28] sm:$0xff] %v3663_v23   ;;  %v2244_v33 = vadd.f32 %v5122_v14, %v2109_v25  ;;  %v2371_v34 = vmax.f32 %v2243_v26, 0.0  ;;  %v2112_v35 = vmul.f32 %v5115_v11, %v1977_v21  ;;  %v1991_v25 = vld [vmem:[#allocation2 + $0x158] sm:$0xff]  ;;  %v1992_v26 = vld [vmem:[#allocation2 + $0x3e0] sm:$0xff] }
 0x21e   : > { %v2113_v36 = vmul.f32 %v5115_v11, %v1978_v22  ;;  %v3673_v38 = vpack.c.bf16 %v2370_v29, %v2369_v24  ;;  %v2245_v39 = vadd.f32 %v5122_v14, %v2110_v30  ;;  %v2246_v40 = vadd.f32 %v5122_v14, %v2111_v31  ;;  %v1993_v31 = vld [vmem:[#allocation2 + $0x218] sm:$0xff] }
 0x21f   : > { %3960 = vst [vmem:[%s4908_s8 + $0x30] sm:$0xff] %v3668_v28   ;;  %v2114_v41 = vmul.f32 %v5115_v11, %v1979_v27  ;;  %v2372_v42 = vmax.f32 %v2244_v33, 0.0  ;;  %v2247_v43 = vadd.f32 %v5122_v14, %v2112_v35  ;;  %v2115_v45 = vmul.f32 %v5115_v11, %v1980_v32  ;;  %v1994_v32 = vld [vmem:[#allocation2 + $0x3f8] sm:$0xff] }
 0x220   : > { %v2248_v44 = vadd.f32 %v5122_v14, %v2113_v36  ;;  %3961 = vst [vmem:[%s4908_s8 + $0x38] sm:$0xff] %v3673_v38   ;;  %v2373_v47 = vmax.f32 %v2245_v39, 0.0  ;;  %v2374_v48 = vmax.f32 %v2246_v40, 0.0  ;;  %v2116_v50 = vmul.f32 %v5115_v11, %v1981_v37  ;;  %v1995_v37 = vld [vmem:[#allocation2 + $0x8] sm:$0xff] }
 0x221   : > { %v2249_v49 = vadd.f32 %v5122_v14, %v2114_v41  ;;  %v3678_v53 = vpack.c.bf16 %v2372_v42, %v2371_v34  ;;  %v2375_v54 = vmax.f32 %v2247_v43, 0.0  ;;  %v2250_v56 = vadd.f32 %v5122_v14, %v2115_v45  ;;  %v1996_v42 = vld [vmem:[#allocation2 + $0x128] sm:$0xff] }
 0x222   : > { %v2376_v55 = vmax.f32 %v2248_v44, 0.0  ;;  %v3683_v59 = vpack.c.bf16 %v2374_v48, %v2373_v47  ;;  %v2117_v61 = vmul.f32 %v5115_v11, %v1982_v46  ;;  %v2251_v62 = vadd.f32 %v5122_v14, %v2116_v50  ;;  %v1997_v47 = vld [vmem:[#allocation2 + $0x2a0] sm:$0xff] }
 0x223   : > { %v2377_v60 = vmax.f32 %v2249_v49, 0.0  ;;  %3962 = vst [vmem:[%s4908_s8 + $0x40] sm:$0xff] %v3678_v53   ;;  %v2378_v1 = vmax.f32 %v2250_v56, 0.0  ;;  %v2118_v2 = vmul.f32 %v5115_v11, %v1983_v51  ;;  %v2119_v3 = vmul.f32 %v5115_v11, %v1984_v52  ;;  %v1998_v56 = vld [vmem:[#allocation2 + $0x3f0] sm:$0xff] }
 0x224   : > { %v3688_v0 = vpack.c.bf16 %v2376_v55, %v2375_v54  ;;  %3963 = vst [vmem:[%s4908_s8 + $0x48] sm:$0xff] %v3683_v59   ;;  %v2252_v5 = vadd.f32 %v5122_v14, %v2117_v61  ;;  %v2379_v6 = vmax.f32 %v2251_v62, 0.0  ;;  %v2120_v7 = vmul.f32 %v5115_v11, %v1985_v57  ;;  %v1999_v61 = vld [vmem:[#allocation2 + $0xa0] sm:$0xff] }
 0x225   : > { %v2121_v8 = vmul.f32 %v5115_v11, %v1986_v58  ;;  %v3693_v10 = vpack.c.bf16 %v2378_v1, %v2377_v60  ;;  %v2253_v12 = vadd.f32 %v5122_v14, %v2118_v2  ;;  %v2254_v13 = vadd.f32 %v5122_v14, %v2119_v3  ;;  %v2000_v62 = vld [vmem:[#allocation2 + $0x2c0] sm:$0xff]  ;;  %v2001_v3 = vld [vmem:[#allocation2 + $0xb0] sm:$0xff] }
 0x226   : > { %3964 = vst [vmem:[%s4908_s8 + $0x50] sm:$0xff] %v3688_v0   ;;  %v2122_v15 = vmul.f32 %v5115_v11, %v1987_v63  ;;  %v2380_v16 = vmax.f32 %v2252_v5, 0.0  ;;  %v2255_v17 = vadd.f32 %v5122_v14, %v2120_v7  ;;  %v2123_v19 = vmul.f32 %v5115_v11, %v1988_v4  ;;  %v2002_v4 = vld [vmem:[#allocation2 + $0x1e0] sm:$0xff] }
 0x227   : > { %v2256_v18 = vadd.f32 %v5122_v14, %v2121_v8  ;;  %3965 = vst [vmem:[%s4908_s8 + $0x58] sm:$0xff] %v3693_v10   ;;  %v2381_v21 = vmax.f32 %v2253_v12, 0.0  ;;  %v2382_v22 = vmax.f32 %v2254_v13, 0.0  ;;  %v2124_v24 = vmul.f32 %v5115_v11, %v1989_v9  ;;  %v2003_v9 = vld [vmem:[#allocation2 + $0x1f0] sm:$0xff] }
 0x228   : > { %v2257_v23 = vadd.f32 %v5122_v14, %v2122_v15  ;;  %v3698_v27 = vpack.c.bf16 %v2380_v16, %v2379_v6  ;;  %v2383_v28 = vmax.f32 %v2255_v17, 0.0  ;;  %v2258_v30 = vadd.f32 %v5122_v14, %v2123_v19  ;;  %v2004_v16 = vld [vmem:[#allocation2 + $0x10] sm:$0xff] }
 0x229   : > { %v2384_v29 = vmax.f32 %v2256_v18, 0.0  ;;  %v3703_v33 = vpack.c.bf16 %v2382_v22, %v2381_v21  ;;  %v2125_v35 = vmul.f32 %v5115_v11, %v1990_v20  ;;  %v2259_v36 = vadd.f32 %v5122_v14, %v2124_v24  ;;  %v2005_v21 = vld [vmem:[#allocation2 + $0x230] sm:$0xff] }
 0x22a   : > { %v2385_v34 = vmax.f32 %v2257_v23, 0.0  ;;  %3966 = vst [vmem:[%s4908_s8 + $0x60] sm:$0xff] %v3698_v27   ;;  %v2386_v39 = vmax.f32 %v2258_v30, 0.0  ;;  %v2126_v40 = vmul.f32 %v5115_v11, %v1991_v25  ;;  %v2127_v41 = vmul.f32 %v5115_v11, %v1992_v26  ;;  %v2006_v30 = vld [vmem:[#allocation2 + $0x240] sm:$0xff] }
 0x22b   : > { %v3708_v38 = vpack.c.bf16 %v2384_v29, %v2383_v28  ;;  %3967 = vst [vmem:[%s4908_s8 + $0x68] sm:$0xff] %v3703_v33   ;;  %v2260_v43 = vadd.f32 %v5122_v14, %v2125_v35  ;;  %v2387_v44 = vmax.f32 %v2259_v36, 0.0  ;;  %v2128_v45 = vmul.f32 %v5115_v11, %v1993_v31  ;;  %v2007_v35 = vld [vmem:[#allocation2 + $0x90] sm:$0xff]  ;;  %v2008_v36 = vld [vmem:[#allocation2 + $0x3a0] sm:$0xff] }
 0x22c   : > { %v2129_v46 = vmul.f32 %v5115_v11, %v1994_v32  ;;  %v3713_v48 = vpack.c.bf16 %v2386_v39, %v2385_v34  ;;  %v2261_v49 = vadd.f32 %v5122_v14, %v2126_v40  ;;  %v2262_v50 = vadd.f32 %v5122_v14, %v2127_v41  ;;  %v2009_v41 = vld [vmem:[#allocation2 + $0x208] sm:$0xff] }
 0x22d   : > { %3968 = vst [vmem:[%s4908_s8 + $0x70] sm:$0xff] %v3708_v38   ;;  %v2130_v51 = vmul.f32 %v5115_v11, %v1995_v37  ;;  %v2388_v52 = vmax.f32 %v2260_v43, 0.0  ;;  %v2263_v53 = vadd.f32 %v5122_v14, %v2128_v45  ;;  %v2131_v55 = vmul.f32 %v5115_v11, %v1996_v42  ;;  %v2010_v42 = vld [vmem:[#allocation2 + $0xd0] sm:$0xff] }
 0x22e   : > { %v2264_v54 = vadd.f32 %v5122_v14, %v2129_v46  ;;  %3969 = vst [vmem:[%s4908_s8 + $0x78] sm:$0xff] %v3713_v48   ;;  %v2389_v57 = vmax.f32 %v2261_v49, 0.0  ;;  %v2390_v58 = vmax.f32 %v2262_v50, 0.0  ;;  %v2132_v60 = vmul.f32 %v5115_v11, %v1997_v47  ;;  %v2011_v47 = vld [vmem:[#allocation2 + $0x88] sm:$0xff] }
 0x22f   : > { %v2265_v59 = vadd.f32 %v5122_v14, %v2130_v51  ;;  %v3718_v63 = vpack.c.bf16 %v2388_v52, %v2387_v44  ;;  %v2391_v0 = vmax.f32 %v2263_v53, 0.0  ;;  %v2266_v2 = vadd.f32 %v5122_v14, %v2131_v55  ;;  %v2012_v52 = vld [vmem:[#allocation2 + $0x2f0] sm:$0xff] }
 0x230   : > { %v2392_v1 = vmax.f32 %v2264_v54, 0.0  ;;  %v3723_v5 = vpack.c.bf16 %v2390_v58, %v2389_v57  ;;  %v2133_v7 = vmul.f32 %v5115_v11, %v1998_v56  ;;  %v2267_v8 = vadd.f32 %v5122_v14, %v2132_v60  ;;  %v2013_v57 = vld [vmem:[#allocation2 + $0x358] sm:$0xff] }
 0x231   : > { %v2393_v6 = vmax.f32 %v2265_v59, 0.0  ;;  %3970 = vst [vmem:[%s4908_s8 + $0x80] sm:$0xff] %v3718_v63   ;;  %v2394_v12 = vmax.f32 %v2266_v2, 0.0  ;;  %v2134_v13 = vmul.f32 %v5115_v11, %v1999_v61  ;;  %v2135_v15 = vmul.f32 %v5115_v11, %v2000_v62  ;;  %v2014_v2 = vld [vmem:[#allocation2 + $0x268] sm:$0xff] }
 0x232   : > { %v3728_v10 = vpack.c.bf16 %v2392_v1, %v2391_v0  ;;  %3971 = vst [vmem:[%s4908_s8 + $0x88] sm:$0xff] %v3723_v5   ;;  %v2268_v17 = vadd.f32 %v5122_v14, %v2133_v7  ;;  %v2395_v18 = vmax.f32 %v2267_v8, 0.0  ;;  %v2136_v19 = vmul.f32 %v5115_v11, %v2001_v3  ;;  %v2015_v7 = vld [vmem:[#allocation2 + $0x350] sm:$0xff]  ;;  %v2016_v8 = vld [vmem:[#allocation2 + $0x188] sm:$0xff] }
 0x233   : > { %v2137_v20 = vmul.f32 %v5115_v11, %v2002_v4  ;;  %v3733_v22 = vpack.c.bf16 %v2394_v12, %v2393_v6  ;;  %v2269_v23 = vadd.f32 %v5122_v14, %v2134_v13  ;;  %v2270_v24 = vadd.f32 %v5122_v14, %v2135_v15  ;;  %v2017_v15 = vld [vmem:[#allocation2 + $0x1d8] sm:$0xff] }
 0x234   : > { %3972 = vst [vmem:[%s4908_s8 + $0x90] sm:$0xff] %v3728_v10   ;;  %v2138_v25 = vmul.f32 %v5115_v11, %v2003_v9  ;;  %v2396_v26 = vmax.f32 %v2268_v17, 0.0  ;;  %v2271_v27 = vadd.f32 %v5122_v14, %v2136_v19  ;;  %v2139_v29 = vmul.f32 %v5115_v11, %v2004_v16  ;;  %v2018_v16 = vld [vmem:[#allocation2 + $0x30] sm:$0xff] }
 0x235   : > { %v2272_v28 = vadd.f32 %v5122_v14, %v2137_v20  ;;  %3973 = vst [vmem:[%s4908_s8 + $0x98] sm:$0xff] %v3733_v22   ;;  %v2397_v31 = vmax.f32 %v2269_v23, 0.0  ;;  %v2398_v32 = vmax.f32 %v2270_v24, 0.0  ;;  %v2140_v34 = vmul.f32 %v5115_v11, %v2005_v21  ;;  %v2019_v21 = vld [vmem:[#allocation2 + $0x140] sm:$0xff] }
 0x236   : > { %v2273_v33 = vadd.f32 %v5122_v14, %v2138_v25  ;;  %v3738_v37 = vpack.c.bf16 %v2396_v26, %v2395_v18  ;;  %v2399_v38 = vmax.f32 %v2271_v27, 0.0  ;;  %v2274_v40 = vadd.f32 %v5122_v14, %v2139_v29  ;;  %v2020_v26 = vld [vmem:[#allocation2 + $0x2a8] sm:$0xff] }
 0x237   : > { %v2400_v39 = vmax.f32 %v2272_v28, 0.0  ;;  %v3743_v43 = vpack.c.bf16 %v2398_v32, %v2397_v31  ;;  %v2141_v45 = vmul.f32 %v5115_v11, %v2006_v30  ;;  %v2275_v46 = vadd.f32 %v5122_v14, %v2140_v34  ;;  %v2021_v31 = vld [vmem:[#allocation2 + $0x130] sm:$0xff] }
 0x238   : > { %v2401_v44 = vmax.f32 %v2273_v33, 0.0  ;;  %3974 = vst [vmem:[%s4908_s8 + $0xa0] sm:$0xff] %v3738_v37   ;;  %v2402_v49 = vmax.f32 %v2274_v40, 0.0  ;;  %v2142_v50 = vmul.f32 %v5115_v11, %v2007_v35  ;;  %v2143_v51 = vmul.f32 %v5115_v11, %v2008_v36  ;;  %v2022_v40 = vld [vmem:[#allocation2 + $0x200] sm:$0xff] }
 0x239   : > { %v3748_v48 = vpack.c.bf16 %v2400_v39, %v2399_v38  ;;  %3975 = vst [vmem:[%s4908_s8 + $0xa8] sm:$0xff] %v3743_v43   ;;  %v2276_v53 = vadd.f32 %v5122_v14, %v2141_v45  ;;  %v2403_v54 = vmax.f32 %v2275_v46, 0.0  ;;  %v2144_v55 = vmul.f32 %v5115_v11, %v2009_v41  ;;  %v2023_v45 = vld [vmem:[#allocation2 + $0x318] sm:$0xff]  ;;  %v2024_v46 = vld [vmem:[#allocation2 + $0x220] sm:$0xff] }
 0x23a   : > { %v2145_v56 = vmul.f32 %v5115_v11, %v2010_v42  ;;  %v3753_v58 = vpack.c.bf16 %v2402_v49, %v2401_v44  ;;  %v2277_v59 = vadd.f32 %v5122_v14, %v2142_v50  ;;  %v2278_v60 = vadd.f32 %v5122_v14, %v2143_v51  ;;  %v2025_v51 = vld [vmem:[#allocation2 + $0x70] sm:$0xff] }
 0x23b   : > { %3976 = vst [vmem:[%s4908_s8 + $0xb0] sm:$0xff] %v3748_v48   ;;  %v2146_v61 = vmul.f32 %v5115_v11, %v2011_v47  ;;  %v2404_v62 = vmax.f32 %v2276_v53, 0.0  ;;  %v2279_v63 = vadd.f32 %v5122_v14, %v2144_v55  ;;  %v2147_v1 = vmul.f32 %v5115_v11, %v2012_v52  ;;  %v2026_v52 = vld [vmem:[#allocation2 + $0x300] sm:$0xff] }
 0x23c   : > { %v2280_v0 = vadd.f32 %v5122_v14, %v2145_v56  ;;  %3977 = vst [vmem:[%s4908_s8 + $0xb8] sm:$0xff] %v3753_v58   ;;  %v2405_v3 = vmax.f32 %v2277_v59, 0.0  ;;  %v2406_v4 = vmax.f32 %v2278_v60, 0.0  ;;  %v2148_v6 = vmul.f32 %v5115_v11, %v2013_v57  ;;  %v2027_v57 = vld [vmem:[#allocation2 + $0xe0] sm:$0xff] }
 0x23d   : > { %v2281_v5 = vadd.f32 %v5122_v14, %v2146_v61  ;;  %v3758_v9 = vpack.c.bf16 %v2404_v62, %v2403_v54  ;;  %v2407_v10 = vmax.f32 %v2279_v63, 0.0  ;;  %v2282_v13 = vadd.f32 %v5122_v14, %v2147_v1  ;;  %v2028_v62 = vld [vmem:[#allocation2 + $0x178] sm:$0xff] }
 0x23e   : > { %v2408_v12 = vmax.f32 %v2280_v0, 0.0  ;;  %v3763_v17 = vpack.c.bf16 %v2406_v4, %v2405_v3  ;;  %v2149_v19 = vmul.f32 %v5115_v11, %v2014_v2  ;;  %v2283_v20 = vadd.f32 %v5122_v14, %v2148_v6  ;;  %v2029_v3 = vld [vmem:[#allocation2 + $0x328] sm:$0xff] }
 0x23f   : > { %v2409_v18 = vmax.f32 %v2281_v5, 0.0  ;;  %3978 = vst [vmem:[%s4908_s8 + $0xc0] sm:$0xff] %v3758_v9   ;;  %v2410_v23 = vmax.f32 %v2282_v13, 0.0  ;;  %v2150_v24 = vmul.f32 %v5115_v11, %v2015_v7  ;;  %v2151_v25 = vmul.f32 %v5115_v11, %v2016_v8  ;;  %v2030_v13 = vld [vmem:[#allocation2 + $0x260] sm:$0xff] }
 0x240   : > { %v3768_v22 = vpack.c.bf16 %v2408_v12, %v2407_v10  ;;  %3979 = vst [vmem:[%s4908_s8 + $0xc8] sm:$0xff] %v3763_v17   ;;  %v2284_v27 = vadd.f32 %v5122_v14, %v2149_v19  ;;  %v2411_v28 = vmax.f32 %v2283_v20, 0.0  ;;  %v2152_v29 = vmul.f32 %v5115_v11, %v2017_v15  ;;  %v2031_v19 = vld [vmem:[#allocation2 + $0x3b8] sm:$0xff] }
 0x241   : > { %v2153_v30 = vmul.f32 %v5115_v11, %v2018_v16  ;;  %v3773_v32 = vpack.c.bf16 %v2410_v23, %v2409_v18  ;;  %v2285_v33 = vadd.f32 %v5122_v14, %v2150_v24  ;;  %v2286_v34 = vadd.f32 %v5122_v14, %v2151_v25  ;;  %v2032_v20 = vld [vmem:[#allocation2 + $0x2b8] sm:$0xff]  ;;  %v2033_v25 = vld [vmem:[#allocation2 + $0x248] sm:$0xff] }
 0x242   : > { %3980 = vst [vmem:[%s4908_s8 + $0xd0] sm:$0xff] %v3768_v22   ;;  %v2154_v35 = vmul.f32 %v5115_v11, %v2019_v21  ;;  %v2412_v36 = vmax.f32 %v2284_v27, 0.0  ;;  %v2287_v37 = vadd.f32 %v5122_v14, %v2152_v29  ;;  %v2155_v39 = vmul.f32 %v5115_v11, %v2020_v26  ;;  %v2034_v26 = vld [vmem:[#allocation2 + $0x40] sm:$0xff] }
 0x243   : > { %v2288_v38 = vadd.f32 %v5122_v14, %v2153_v30  ;;  %3981 = vst [vmem:[%s4908_s8 + $0xd8] sm:$0xff] %v3773_v32   ;;  %v2413_v41 = vmax.f32 %v2285_v33, 0.0  ;;  %v2414_v42 = vmax.f32 %v2286_v34, 0.0  ;;  %v2156_v44 = vmul.f32 %v5115_v11, %v2021_v31  ;;  %v2035_v31 = vld [vmem:[#allocation2 + $0x20] sm:$0xff] }
 0x244   : > { %v2289_v43 = vadd.f32 %v5122_v14, %v2154_v35  ;;  %v3778_v47 = vpack.c.bf16 %v2412_v36, %v2411_v28  ;;  %v2415_v48 = vmax.f32 %v2287_v37, 0.0  ;;  %v2290_v50 = vadd.f32 %v5122_v14, %v2155_v39  ;;  %v2036_v36 = vld [vmem:[#allocation2 + $0xe8] sm:$0xff] }
 0x245   : > { %v2416_v49 = vmax.f32 %v2288_v38, 0.0  ;;  %v3783_v53 = vpack.c.bf16 %v2414_v42, %v2413_v41  ;;  %v2157_v55 = vmul.f32 %v5115_v11, %v2022_v40  ;;  %v2291_v56 = vadd.f32 %v5122_v14, %v2156_v44  ;;  %v2037_v41 = vld [vmem:[#allocation2 + $0x288] sm:$0xff] }
 0x246   : > { %v2417_v54 = vmax.f32 %v2289_v43, 0.0  ;;  %3982 = vst [vmem:[%s4908_s8 + $0xe0] sm:$0xff] %v3778_v47   ;;  %v2418_v59 = vmax.f32 %v2290_v50, 0.0  ;;  %v2158_v60 = vmul.f32 %v5115_v11, %v2023_v45  ;;  %v2159_v61 = vmul.f32 %v5115_v11, %v2024_v46  ;;  %v2038_v50 = vld [vmem:[#allocation2 + $0x3a8] sm:$0xff] }
 0x247   : > { %v3788_v58 = vpack.c.bf16 %v2416_v49, %v2415_v48  ;;  %3983 = vst [vmem:[%s4908_s8 + $0xe8] sm:$0xff] %v3783_v53   ;;  %v2292_v63 = vadd.f32 %v5122_v14, %v2157_v55  ;;  %v2419_v0 = vmax.f32 %v2291_v56, 0.0  ;;  %v2160_v1 = vmul.f32 %v5115_v11, %v2025_v51  ;;  %v2039_v55 = vld [vmem:[#allocation2 + $0x3c8] sm:$0xff]  ;;  %v2040_v56 = vld [vmem:[#allocation2 + $0x160] sm:$0xff] }
 0x248   : > { %v2161_v2 = vmul.f32 %v5115_v11, %v2026_v52  ;;  %v3793_v4 = vpack.c.bf16 %v2418_v59, %v2417_v54  ;;  %v2293_v5 = vadd.f32 %v5122_v14, %v2158_v60  ;;  %v2294_v6 = vadd.f32 %v5122_v14, %v2159_v61  ;;  %v2041_v61 = vld [vmem:[#allocation2 + $0x2c8] sm:$0xff] }
 0x249   : > { %3984 = vst [vmem:[%s4908_s8 + $0xf0] sm:$0xff] %v3788_v58   ;;  %v2162_v7 = vmul.f32 %v5115_v11, %v2027_v57  ;;  %v2420_v8 = vmax.f32 %v2292_v63, 0.0  ;;  %v2295_v9 = vadd.f32 %v5122_v14, %v2160_v1  ;;  %v2163_v12 = vmul.f32 %v5115_v11, %v2028_v62  ;;  %v2042_v62 = vld [vmem:[#allocation2 + $0x210] sm:$0xff] }
 0x24a   : > { %v2296_v10 = vadd.f32 %v5122_v14, %v2161_v2  ;;  %3985 = vst [vmem:[%s4908_s8 + $0xf8] sm:$0xff] %v3793_v4   ;;  %v2421_v15 = vmax.f32 %v2293_v5, 0.0  ;;  %v2422_v16 = vmax.f32 %v2294_v6, 0.0  ;;  %v2164_v18 = vmul.f32 %v5115_v11, %v2029_v3  ;;  %v2043_v3 = vld [vmem:[#allocation2 + $0x3d8] sm:$0xff] }
 0x24b   : > { %v2297_v17 = vadd.f32 %v5122_v14, %v2162_v7  ;;  %v3798_v21 = vpack.c.bf16 %v2420_v8, %v2419_v0  ;;  %v2423_v22 = vmax.f32 %v2295_v9, 0.0  ;;  %v2298_v24 = vadd.f32 %v5122_v14, %v2163_v12  ;;  %v2044_v8 = vld [vmem:[#allocation2 + $0x1e8] sm:$0xff] }
 0x24c   : > { %v2424_v23 = vmax.f32 %v2296_v10, 0.0  ;;  %v3803_v27 = vpack.c.bf16 %v2422_v16, %v2421_v15  ;;  %v2165_v29 = vmul.f32 %v5115_v11, %v2030_v13  ;;  %v2299_v30 = vadd.f32 %v5122_v14, %v2164_v18  ;;  %v2045_v15 = vld [vmem:[#allocation2 + $0x1b0] sm:$0xff] }
 0x24d   : > { %v2425_v28 = vmax.f32 %v2297_v17, 0.0  ;;  %3986 = vst [vmem:[%s4908_s8 + $0x100] sm:$0xff] %v3798_v21   ;;  %v2426_v33 = vmax.f32 %v2298_v24, 0.0  ;;  %v2166_v34 = vmul.f32 %v5115_v11, %v2031_v19  ;;  %v2167_v35 = vmul.f32 %v5115_v11, %v2032_v20  ;;  %v2046_v24 = vld [vmem:[#allocation2 + $0x1c8] sm:$0xff] }
 0x24e   : > { %v3808_v32 = vpack.c.bf16 %v2424_v23, %v2423_v22  ;;  %3987 = vst [vmem:[%s4908_s8 + $0x108] sm:$0xff] %v3803_v27   ;;  %v2300_v37 = vadd.f32 %v5122_v14, %v2165_v29  ;;  %v2427_v38 = vmax.f32 %v2299_v30, 0.0  ;;  %v2168_v39 = vmul.f32 %v5115_v11, %v2033_v25  ;;  %v2047_v29 = vld [vmem:[#allocation2 + $0x2d0] sm:$0xff] }
 0x24f   : > { %v2169_v40 = vmul.f32 %v5115_v11, %v2034_v26  ;;  %v3813_v42 = vpack.c.bf16 %v2426_v33, %v2425_v28  ;;  %v2301_v43 = vadd.f32 %v5122_v14, %v2166_v34  ;;  %v2302_v44 = vadd.f32 %v5122_v14, %v2167_v35  ;;  %v2048_v30 = vld [vmem:[#allocation2 + $0x1d0] sm:$0xff]  ;;  %v2049_v35 = vld [vmem:[#allocation2 + $0x58] sm:$0xff] }
 0x250   : > { %3988 = vst [vmem:[%s4908_s8 + $0x110] sm:$0xff] %v3808_v32   ;;  %v2170_v45 = vmul.f32 %v5115_v11, %v2035_v31  ;;  %v2428_v46 = vmax.f32 %v2300_v37, 0.0  ;;  %v2303_v47 = vadd.f32 %v5122_v14, %v2168_v39  ;;  %v2171_v49 = vmul.f32 %v5115_v11, %v2036_v36  ;;  %v2050_v36 = vld [vmem:[#allocation2 + $0x120] sm:$0xff] }
 0x251   : > { %v2304_v48 = vadd.f32 %v5122_v14, %v2169_v40  ;;  %3989 = vst [vmem:[%s4908_s8 + $0x118] sm:$0xff] %v3813_v42   ;;  %v2429_v51 = vmax.f32 %v2301_v43, 0.0  ;;  %v2430_v52 = vmax.f32 %v2302_v44, 0.0  ;;  %v2172_v54 = vmul.f32 %v5115_v11, %v2037_v41  ;;  %v2051_v41 = vld [vmem:[#allocation2 + $0x198] sm:$0xff] }
 0x252   : > { %v2305_v53 = vadd.f32 %v5122_v14, %v2170_v45  ;;  %v3818_v57 = vpack.c.bf16 %v2428_v46, %v2427_v38  ;;  %v2431_v58 = vmax.f32 %v2303_v47, 0.0  ;;  %v2306_v60 = vadd.f32 %v5122_v14, %v2171_v49  ;;  %v2052_v46 = vld [vmem:[#allocation2 + $0x2e8] sm:$0xff] }
 0x253   : > { %v2432_v59 = vmax.f32 %v2304_v48, 0.0  ;;  %v3823_v63 = vpack.c.bf16 %v2430_v52, %v2429_v51  ;;  %v2173_v1 = vmul.f32 %v5115_v11, %v2038_v50  ;;  %v2307_v2 = vadd.f32 %v5122_v14, %v2172_v54  ;;  %v2053_v51 = vld [vmem:[#allocation2 + $0x1f8] sm:$0xff] }
 0x254   : > { %v2433_v0 = vmax.f32 %v2305_v53, 0.0  ;;  %3990 = vst [vmem:[%s4908_s8 + $0x120] sm:$0xff] %v3818_v57   ;;  %v2434_v5 = vmax.f32 %v2306_v60, 0.0  ;;  %v2174_v6 = vmul.f32 %v5115_v11, %v2039_v55  ;;  %v2175_v7 = vmul.f32 %v5115_v11, %v2040_v56  ;;  %v2054_v60 = vld [vmem:[#allocation2 + $0x238] sm:$0xff] }
 0x255   : > { %v3828_v4 = vpack.c.bf16 %v2432_v59, %v2431_v58  ;;  %3991 = vst [vmem:[%s4908_s8 + $0x128] sm:$0xff] %v3823_v63   ;;  %v2308_v9 = vadd.f32 %v5122_v14, %v2173_v1  ;;  %v2435_v10 = vmax.f32 %v2307_v2, 0.0  ;;  %v2176_v12 = vmul.f32 %v5115_v11, %v2041_v61  ;;  %v2055_v1 = vld [vmem:[#allocation2 + $0x398] sm:$0xff]  ;;  %v2056_v2 = vld [vmem:[#allocation2 + $0x390] sm:$0xff] }
 0x256   : > { %v2177_v13 = vmul.f32 %v5115_v11, %v2042_v62  ;;  %v3833_v16 = vpack.c.bf16 %v2434_v5, %v2433_v0  ;;  %v2309_v17 = vadd.f32 %v5122_v14, %v2174_v6  ;;  %v2310_v18 = vadd.f32 %v5122_v14, %v2175_v7  ;;  %v2057_v7 = vld [vmem:[#allocation2 + $0x1a0] sm:$0xff] }
 0x257   : > { %3992 = vst [vmem:[%s4908_s8 + $0x130] sm:$0xff] %v3828_v4   ;;  %v2178_v19 = vmul.f32 %v5115_v11, %v2043_v3  ;;  %v2436_v20 = vmax.f32 %v2308_v9, 0.0  ;;  %v2311_v21 = vadd.f32 %v5122_v14, %v2176_v12  ;;  %v2179_v23 = vmul.f32 %v5115_v11, %v2044_v8  ;;  %v2058_v8 = vld [vmem:[#allocation2 + $0xa8] sm:$0xff] }
 0x258   : > { %v2312_v22 = vadd.f32 %v5122_v14, %v2177_v13  ;;  %3993 = vst [vmem:[%s4908_s8 + $0x138] sm:$0xff] %v3833_v16   ;;  %v2437_v25 = vmax.f32 %v2309_v17, 0.0  ;;  %v2438_v26 = vmax.f32 %v2310_v18, 0.0  ;;  %v2180_v28 = vmul.f32 %v5115_v11, %v2045_v15  ;;  %v2059_v15 = vld [vmem:[#allocation2 + $0x258] sm:$0xff] }
 0x259   : > { %v2313_v27 = vadd.f32 %v5122_v14, %v2178_v19  ;;  %v3838_v31 = vpack.c.bf16 %v2436_v20, %v2435_v10  ;;  %v2439_v32 = vmax.f32 %v2311_v21, 0.0  ;;  %v2314_v34 = vadd.f32 %v5122_v14, %v2179_v23  ;;  %v2060_v20 = vld [vmem:[#allocation2 + $0x2d8] sm:$0xff] }
 0x25a   : > { %v2440_v33 = vmax.f32 %v2312_v22, 0.0  ;;  %v3843_v37 = vpack.c.bf16 %v2438_v26, %v2437_v25  ;;  %v2181_v39 = vmul.f32 %v5115_v11, %v2046_v24  ;;  %v2315_v40 = vadd.f32 %v5122_v14, %v2180_v28  ;;  %v2061_v25 = vld [vmem:[#allocation2 + $0xf0] sm:$0xff] }
 0x25b   : > { %v2441_v38 = vmax.f32 %v2313_v27, 0.0  ;;  %3994 = vst [vmem:[%s4908_s8 + $0x140] sm:$0xff] %v3838_v31   ;;  %v2442_v43 = vmax.f32 %v2314_v34, 0.0  ;;  %v2182_v44 = vmul.f32 %v5115_v11, %v2047_v29  ;;  %v2183_v45 = vmul.f32 %v5115_v11, %v2048_v30  ;;  %v2062_v34 = vld [vmem:[#allocation2 + $0x180] sm:$0xff] }
 0x25c   : > { %v3848_v42 = vpack.c.bf16 %v2440_v33, %v2439_v32  ;;  %3995 = vst [vmem:[%s4908_s8 + $0x148] sm:$0xff] %v3843_v37   ;;  %v2316_v47 = vadd.f32 %v5122_v14, %v2181_v39  ;;  %v2443_v48 = vmax.f32 %v2315_v40, 0.0  ;;  %v2184_v49 = vmul.f32 %v5115_v11, %v2049_v35  ;;  %v2063_v39 = vld [vmem:[#allocation2 + $0x170] sm:$0xff] }
 0x25d   : > { %v2185_v50 = vmul.f32 %v5115_v11, %v2050_v36  ;;  %v3853_v52 = vpack.c.bf16 %v2442_v43, %v2441_v38  ;;  %v2317_v53 = vadd.f32 %v5122_v14, %v2182_v44  ;;  %v2318_v54 = vadd.f32 %v5122_v14, %v2183_v45  ;;  %v2064_v40 = vld [vmem:[#allocation2 + $0x3d0] sm:$0xff]  ;;  %v5381_v44 = vld [vmem:[%s5579_s1] ss:$0 sm:$0xff] }
 0x25e   : > { %3996 = vst [vmem:[%s4908_s8 + $0x150] sm:$0xff] %v3848_v42   ;;  %v2186_v55 = vmul.f32 %v5115_v11, %v2051_v41  ;;  %v2444_v56 = vmax.f32 %v2316_v47, 0.0  ;;  %v2319_v57 = vadd.f32 %v5122_v14, %v2184_v49  ;;  %v2187_v59 = vmul.f32 %v5115_v11, %v2052_v46  ;;  %v2065_v46 = vld [vmem:[#allocation2 + $0x250] sm:$0xff]  ;;  %v2066_v47 = vld [vmem:[#allocation2 + $0x378] sm:$0xff] }
 0x25f   : > { %v2320_v58 = vadd.f32 %v5122_v14, %v2185_v50  ;;  %3997 = vst [vmem:[%s4908_s8 + $0x158] sm:$0xff] %v3853_v52   ;;  %v2445_v61 = vmax.f32 %v2317_v53, 0.0  ;;  %v2446_v62 = vmax.f32 %v2318_v54, 0.0  ;;  %v2188_v0 = vmul.f32 %v5115_v11, %v2053_v51  ;;  %v2067_v51 = vld [vmem:[#allocation2 + $0xb8] sm:$0xff] }
 0x260   : > { %v2321_v63 = vadd.f32 %v5122_v14, %v2186_v55  ;;  %v3858_v3 = vpack.c.bf16 %v2444_v56, %v2443_v48  ;;  %v2447_v4 = vmax.f32 %v2319_v57, 0.0  ;;  %v2322_v6 = vadd.f32 %v5122_v14, %v2187_v59  ;;  %v2068_v56 = vld [vmem:[#allocation2 + $0x38] sm:$0xff] }
 0x261   : > { %v2448_v5 = vmax.f32 %v2320_v58, 0.0  ;;  %v3863_v9 = vpack.c.bf16 %v2446_v62, %v2445_v61  ;;  %v2189_v12 = vmul.f32 %v5115_v11, %v2054_v60  ;;  %v2323_v13 = vadd.f32 %v5122_v14, %v2188_v0  ;;  %v2069_v61 = vld [vmem:[#allocation2 + $0x78] sm:$0xff] }
 0x262   : > { %v2449_v10 = vmax.f32 %v2321_v63, 0.0  ;;  %3998 = vst [vmem:[%s4908_s8 + $0x160] sm:$0xff] %v3858_v3   ;;  %v2450_v17 = vmax.f32 %v2322_v6, 0.0  ;;  %v2190_v18 = vmul.f32 %v5115_v11, %v2055_v1  ;;  %v2191_v19 = vmul.f32 %v5115_v11, %v2056_v2  ;;  %v2070_v6 = vld [vmem:[#allocation2 + $0x308] sm:$0xff] }
 0x263   : > { %v3868_v16 = vpack.c.bf16 %v2448_v5, %v2447_v4  ;;  %3999 = vst [vmem:[%s4908_s8 + $0x168] sm:$0xff] %v3863_v9   ;;  %v2324_v21 = vadd.f32 %v5122_v14, %v2189_v12  ;;  %v2451_v22 = vmax.f32 %v2323_v13, 0.0  ;;  %v2192_v23 = vmul.f32 %v5115_v11, %v2057_v7  ;;  %v2071_v12 = vld [vmem:[#allocation2 + $0x370] sm:$0xff]  ;;  %v2072_v13 = vld [vmem:[#allocation2 + $0xc8] sm:$0xff] }
 0x264   : > { %v2193_v24 = vmul.f32 %v5115_v11, %v2058_v8  ;;  %v3873_v26 = vpack.c.bf16 %v2450_v17, %v2449_v10  ;;  %v2325_v27 = vadd.f32 %v5122_v14, %v2190_v18  ;;  %v2326_v28 = vadd.f32 %v5122_v14, %v2191_v19  ;;  %v2073_v19 = vld [vmem:[#allocation2 + $0x278] sm:$0xff] }
 0x265   : > { %4000 = vst [vmem:[%s4908_s8 + $0x170] sm:$0xff] %v3868_v16   ;;  %v2194_v29 = vmul.f32 %v5115_v11, %v2059_v15  ;;  %v2452_v30 = vmax.f32 %v2324_v21, 0.0  ;;  %v2327_v31 = vadd.f32 %v5122_v14, %v2192_v23  ;;  %v2195_v33 = vmul.f32 %v5115_v11, %v2060_v20  ;;  %v2074_v20 = vld [vmem:[#allocation2 + $0x360] sm:$0xff] }
 0x266   : > { %v2328_v32 = vadd.f32 %v5122_v14, %v2193_v24  ;;  %4001 = vst [vmem:[%s4908_s8 + $0x178] sm:$0xff] %v3873_v26   ;;  %v2453_v35 = vmax.f32 %v2325_v27, 0.0  ;;  %v2454_v36 = vmax.f32 %v2326_v28, 0.0  ;;  %v2196_v38 = vmul.f32 %v5115_v11, %v2061_v25  ;;  %v5387_v11 = vld [vmem:[%s5578_s4] ss:$0 sm:$0xff]  ;;  %v2075_v25 = vld [vmem:[#allocation2 + $0x228] sm:$0xff] }
 0x267   : > { %v2329_v37 = vadd.f32 %v5122_v14, %v2194_v29  ;;  %v3878_v41 = vpack.c.bf16 %v2452_v30, %v2451_v22  ;;  %v2455_v42 = vmax.f32 %v2327_v31, 0.0  ;;  %v2330_v45 = vadd.f32 %v5381_v44, %v2195_v33  ;;  %v2076_v30 = vld [vmem:[#allocation2 + $0x348] sm:$0xff] }
 0x268   : > { %v2456_v43 = vmax.f32 %v2328_v32, 0.0  ;;  %v3883_v48 = vpack.c.bf16 %v2454_v36, %v2453_v35  ;;  %v2197_v49 = vmul.f32 %v5387_v11, %v2062_v34  ;;  %v2331_v50 = vadd.f32 %v5381_v44, %v2196_v38  ;;  %v2077_v35 = vld [vmem:[#allocation2 + $0x148] sm:$0xff] }
 0x269   : > { %v2457_v14 = vmax.f32 %v2329_v37, 0.0  ;;  %4002 = vst [vmem:[%s4908_s8 + $0x180] sm:$0xff] %v3878_v41   ;;  %v2458_v53 = vmax.f32 %v2330_v45, 0.0  ;;  %v2198_v54 = vmul.f32 %v5387_v11, %v2063_v39  ;;  %v2199_v55 = vmul.f32 %v5387_v11, %v2064_v40  ;;  %v2078_v45 = vld [vmem:[#allocation2 + $0xf8] sm:$0xff] }
 0x26a   : > { %v3888_v52 = vpack.c.bf16 %v2456_v43, %v2455_v42  ;;  %4003 = vst [vmem:[%s4908_s8 + $0x188] sm:$0xff] %v3883_v48   ;;  %v2332_v57 = vadd.f32 %v5381_v44, %v2197_v49  ;;  %v2459_v58 = vmax.f32 %v2331_v50, 0.0  ;;  %v2200_v59 = vmul.f32 %v5387_v11, %v2065_v46  ;;  %v2079_v49 = vld [vmem:[#allocation2 + $0x68] sm:$0xff]  ;;  %v2080_v50 = vld [vmem:[#allocation2] sm:$0xff] }
 0x26b   : > { %v2201_v60 = vmul.f32 %v5387_v11, %v2066_v47  ;;  %v3893_v62 = vpack.c.bf16 %v2458_v53, %v2457_v14  ;;  %v2333_v63 = vadd.f32 %v5381_v44, %v2198_v54  ;;  %v2334_v0 = vadd.f32 %v5381_v44, %v2199_v55  ;;  %v2081_v55 = vld [vmem:[#allocation2 + $0x298] sm:$0xff] }
 0x26c   : > { %4004 = vst [vmem:[%s4908_s8 + $0x190] sm:$0xff] %v3888_v52   ;;  %v2202_v1 = vmul.f32 %v5387_v11, %v2067_v51  ;;  %v2460_v2 = vmax.f32 %v2332_v57, 0.0  ;;  %v2335_v3 = vadd.f32 %v5381_v44, %v2200_v59  ;;  %v2203_v5 = vmul.f32 %v5387_v11, %v2068_v56  ;;  %v2082_v56 = vld [vmem:[#allocation2 + $0x270] sm:$0xff] }
 0x26d   : > { %v2336_v4 = vadd.f32 %v5381_v44, %v2201_v60  ;;  %4005 = vst [vmem:[%s4908_s8 + $0x198] sm:$0xff] %v3893_v62   ;;  %v2461_v7 = vmax.f32 %v2333_v63, 0.0  ;;  %v2462_v8 = vmax.f32 %v2334_v0, 0.0  ;;  %v2204_v10 = vmul.f32 %v5387_v11, %v2069_v61  ;;  %v2083_v61 = vld [vmem:[#allocation2 + $0x310] sm:$0xff] }
 0x26e   : > { %v2337_v9 = vadd.f32 %v5381_v44, %v2202_v1  ;;  %v3898_v15 = vpack.c.bf16 %v2460_v2, %v2459_v58  ;;  %v2463_v16 = vmax.f32 %v2335_v3, 0.0  ;;  %v2338_v18 = vadd.f32 %v5381_v44, %v2203_v5  ;;  %v2084_v2 = vld [vmem:[#allocation2 + $0x190] sm:$0xff] }
 0x26f   : > { %v2464_v17 = vmax.f32 %v2336_v4, 0.0  ;;  %v3903_v21 = vpack.c.bf16 %v2462_v8, %v2461_v7  ;;  %v2205_v23 = vmul.f32 %v5387_v11, %v2070_v6  ;;  %v2339_v24 = vadd.f32 %v5381_v44, %v2204_v10 }
 0x270   : > { %v2465_v22 = vmax.f32 %v2337_v9, 0.0  ;;  %4006 = vst [vmem:[%s4908_s8 + $0x1a0] sm:$0xff] %v3898_v15   ;;  %v2466_v27 = vmax.f32 %v2338_v18, 0.0  ;;  %v2206_v28 = vmul.f32 %v5387_v11, %v2071_v12  ;;  %v2207_v29 = vmul.f32 %v5387_v11, %v2072_v13 }
 0x271   : > { %v3908_v26 = vpack.c.bf16 %v2464_v17, %v2463_v16  ;;  %4007 = vst [vmem:[%s4908_s8 + $0x1a8] sm:$0xff] %v3903_v21   ;;  %v2340_v31 = vadd.f32 %v5381_v44, %v2205_v23  ;;  %v2467_v32 = vmax.f32 %v2339_v24, 0.0  ;;  %v2208_v33 = vmul.f32 %v5387_v11, %v2073_v19 }
 0x272   : > { %v2209_v34 = vmul.f32 %v5387_v11, %v2074_v20  ;;  %v3913_v36 = vpack.c.bf16 %v2466_v27, %v2465_v22  ;;  %v2341_v37 = vadd.f32 %v5381_v44, %v2206_v28  ;;  %v2342_v38 = vadd.f32 %v5381_v44, %v2207_v29 }
 0x273   : > { %4008 = vst [vmem:[%s4908_s8 + $0x1b0] sm:$0xff] %v3908_v26   ;;  %v2210_v39 = vmul.f32 %v5387_v11, %v2075_v25  ;;  %v2468_v40 = vmax.f32 %v2340_v31, 0.0  ;;  %v2343_v41 = vadd.f32 %v5381_v44, %v2208_v33  ;;  %v2211_v43 = vmul.f32 %v5387_v11, %v2076_v30 }
 0x274   : > { %v2344_v42 = vadd.f32 %v5381_v44, %v2209_v34  ;;  %4009 = vst [vmem:[%s4908_s8 + $0x1b8] sm:$0xff] %v3913_v36   ;;  %v2469_v46 = vmax.f32 %v2341_v37, 0.0  ;;  %v2470_v47 = vmax.f32 %v2342_v38, 0.0  ;;  %v2212_v14 = vmul.f32 %v5387_v11, %v2077_v35 }
 0x275   : > { %v2345_v48 = vadd.f32 %v5381_v44, %v2210_v39  ;;  %v3918_v51 = vpack.c.bf16 %v2468_v40, %v2467_v32  ;;  %v2471_v52 = vmax.f32 %v2343_v41, 0.0  ;;  %v2346_v54 = vadd.f32 %v5381_v44, %v2211_v43 }
 0x276   : > { %v2472_v53 = vmax.f32 %v2344_v42, 0.0  ;;  %v3923_v57 = vpack.c.bf16 %v2470_v47, %v2469_v46  ;;  %v2213_v59 = vmul.f32 %v5387_v11, %v2078_v45  ;;  %v2347_v60 = vadd.f32 %v5381_v44, %v2212_v14 }
 0x277   : > { %v2473_v58 = vmax.f32 %v2345_v48, 0.0  ;;  %4010 = vst [vmem:[%s4908_s8 + $0x1c0] sm:$0xff] %v3918_v51   ;;  %v2474_v63 = vmax.f32 %v2346_v54, 0.0  ;;  %v2214_v0 = vmul.f32 %v5387_v11, %v2079_v49  ;;  %v2215_v1 = vmul.f32 %v5387_v11, %v2080_v50 }
 0x278   : > { %v3928_v62 = vpack.c.bf16 %v2472_v53, %v2471_v52  ;;  %4011 = vst [vmem:[%s4908_s8 + $0x1c8] sm:$0xff] %v3923_v57   ;;  %v2348_v3 = vadd.f32 %v5381_v44, %v2213_v59  ;;  %v2475_v4 = vmax.f32 %v2347_v60, 0.0  ;;  %v2216_v5 = vmul.f32 %v5387_v11, %v2081_v55 }
 0x279   : > { %v2217_v6 = vmul.f32 %v5387_v11, %v2082_v56  ;;  %v3933_v7 = vpack.c.bf16 %v2474_v63, %v2473_v58  ;;  %v2349_v8 = vadd.f32 %v5381_v44, %v2214_v0  ;;  %v2350_v9 = vadd.f32 %v5381_v44, %v2215_v1 }
 0x27a   : > { %4012 = vst [vmem:[%s4908_s8 + $0x1d0] sm:$0xff] %v3928_v62   ;;  %v2218_v10 = vmul.f32 %v5387_v11, %v2083_v61  ;;  %v2476_v12 = vmax.f32 %v2348_v3, 0.0  ;;  %v2351_v13 = vadd.f32 %v5381_v44, %v2216_v5  ;;  %v2219_v16 = vmul.f32 %v5387_v11, %v2084_v2 }
 0x27b   : > { %v2352_v15 = vadd.f32 %v5381_v44, %v2217_v6  ;;  %4013 = vst [vmem:[%s4908_s8 + $0x1d8] sm:$0xff] %v3933_v7   ;;  %v2477_v17 = vmax.f32 %v2349_v8, 0.0  ;;  %v2478_v18 = vmax.f32 %v2350_v9, 0.0 }
 0x27c   : > { %v2353_v19 = vadd.f32 %v5381_v44, %v2218_v10  ;;  %v3938_v20 = vpack.c.bf16 %v2476_v12, %v2475_v4  ;;  %v2479_v21 = vmax.f32 %v2351_v13, 0.0  ;;  %v2354_v23 = vadd.f32 %v5381_v44, %v2219_v16 }
 0x27d   : > { %v2480_v22 = vmax.f32 %v2352_v15, 0.0  ;;  %v3943_v24 = vpack.c.bf16 %v2478_v18, %v2477_v17 }
 0x27e   : > { %v2481_v25 = vmax.f32 %v2353_v19, 0.0  ;;  %4014 = vst [vmem:[%s4908_s8 + $0x1e0] sm:$0xff] %v3938_v20   ;;  %v2482_v27 = vmax.f32 %v2354_v23, 0.0 }
 0x27f   : > { %v3948_v26 = vpack.c.bf16 %v2480_v22, %v2479_v21  ;;  %4015 = vst [vmem:[%s4908_s8 + $0x1e8] sm:$0xff] %v3943_v24  }
 0x280   : > { %v3953_v28 = vpack.c.bf16 %v2482_v27, %v2481_v25 }
 0x281   : > { %4016 = vst [vmem:[%s4908_s8 + $0x1f0] sm:$0xff] %v3948_v26  }
 0x282   : > { %4017 = vst [vmem:[%s4908_s8 + $0x1f8] sm:$0xff] %v3953_v28  }
 0x283 PF: > { %s5580_s11 = sld [smem:[#allocation14_spill]]  ;;  %s3138_s18 = sshll.u32 %s4908_s8, 4  ;;  %s5459_s18 = int_to_ptr.vmem [resolvable:$true] %s3138_s18 }
 0x284   : > { %s5581_s14 = sld [smem:[#allocation21_spill]]  ;;  %s5463_s21 = scalar_lea.sflag [#allocation5], %s303_s10 }
 0x285   : > { %s4517_s0 = scalar_lea.vmem %s5459_s18, 8192  ;;  %s4673_s24 = smov [#allocation8]  }
 0x286   : > { %p4518_p3 = scmp.ne.s32.totalorder %s5459_s18, %s4517_s0  ;;  %s4521_s30 = sshll.u32 %s4673_s24, 4  ;;  %s4522_s30 = int_to_ptr.vmem [resolvable:$false] %s4521_s30 }
 0x287   : > { %s4523_s7 = scalar_lea.vmem %s4522_s30, 16384  ;;  %p4524_p11 = scmp.lt.s32.totalorder %s5459_s18, %s4522_s30 }
 0x288   : > { %p4519_p0 = pnand %p4518_p3, %p4863_p7  ;;  %p4525_p4 = scmp.lt.s32.totalorder %s4523_s7, %s4517_s0 }
 0x289   : > { %s3634_s29 = sshll.u32 %s5580_s11, 13 }
 0x28a   : > { %s5456_s6 = scalar_lea.hbm %s5581_s14, %s3634_s29  ;;  %p4520_p10 = pneg %p4519_p0 }
 0x28b   : > { %p4526_p9 = por %p4525_p4, %p4524_p11 }
 0x28d   : > { %p4527_p12 = pnand %p4526_p9, %p4520_p10 }
 0x28f   : > { %4530 = shalt.err (!%p4527_p12)
}
 0x290   : > { %s4531_s10 = scalar_lea.hbm %s5456_s6, 8192  ;;  %s4535_s11 = scalar_lea.hbm %s5581_s14, 16384 }
 0x291   : > { %p4532_p8 = scmp.ne.s32.totalorder %s5456_s6, %s4531_s10  ;;  %p4536_p13 = scmp.lt.s32.totalorder %s5456_s6, %s5581_s14 }
 0x292   : > { %p4537_p1 = scmp.lt.s32.totalorder %s4535_s11, %s4531_s10 }
 0x293   : > { %p4533_p6 = pnand %p4532_p8, %p4863_p7 }
 0x294   : > { %p4538_p3 = por %p4537_p1, %p4536_p13 }
 0x295   : > { %p4534_p2 = pneg %p4533_p6 }
 0x297   : > { %p4539_p0 = pnand %p4538_p3, %p4534_p2 }
 0x299   : > { %4542 = shalt.err (!%p4539_p0)
}
 0x29a   : > { %s4674_s2 = smov 64   ;;  %s4675_s0 = smov 4  }
 0x29b   : > { %4254 = dma.vmem_to_hbm [thread:$0]  (%p4863_p7), %s5459_s18, 8192, %s5456_s6, %s5463_s21, %s4674_s2, %s4674_s2, %s4675_s0  }
 0x29c PF: > { %s5582_s24 = sld [smem:[#allocation12_spill]]  ;;  %p4268_p10 = scmp.ge.s32.totalorder %s4665_s28, 2 }
 0x29e   : > { %p4264_p11 = pnand %p4268_p10, %p4869_p5 }
 0x2a0   : > { %p4265_p4 = pneg %p4264_p11 }
 0x2a2   : > { %s3153_s30 = sand.u32 1, %s5582_s24  }
 0x2a3   : > { %s3154_s7 = scalar_lea.sflag [#allocation5], %s3153_s30 }
 0x2a4   : > { %4608 = dma.done.wait (%p4265_p4), %s3154_s7, 8192  }
 0x2a5   : > { %4610 = vsyncadd (%p4265_p4), %s3154_s7, 4294959104  ;;  %s23_s28 = sadd.s32 1, %s4665_s28   ;;  %s5584_s5 = sld [smem:[#allocation15_spill]] }
 0x2a6   : > { %p5491_p9 = scmp.ge.s32.totalorder %s23_s28, 6   ;;  %s5585_s6 = sld [smem:[#allocation16_spill]] }
 0x2a7   : > { %s5586_s15 = smov %s4617_s16  ;;  %s5587_s16 = smov %s4621_s17 }
 0x2a8   : > { %s5588_s17 = smov %s4802_s12  ;;  %s5589_s18 = smov %s4629_s19 }
 0x2a9   : > { %s5590_s19 = smov %s4633_s20  ;;  %s5591_s20 = smov %s4840_s3 }
 0x2aa   : > { %s5592_s21 = smov %s4641_s22  ;;  %s5593_s22 = smov %s4645_s23 }
 0x2ab   : > { %s5594_s23 = smov %s4805_s13  ;;  %s5595_s24 = smov %s4657_s26 }
 0x2ac   : > { %s5596_s25 = smov %s4661_s27  ;;  %s5597_s26 = smov %s5584_s5 }
 0x2ad   : > { %s5598_s27 = smov %s5585_s6  ;;  %22 = sbr.rel (!%p5491_p9) target bundleno = 18 (0x12), region = 108 }
 0x2b2   :  { %3159 = vsyncpa [#allocation4], 1 }
 0x2b3   :  { %3161 = vsyncpa [#allocation4 + $0x1], 1 }
 0x2b4   :  { %3162 = vsyncpa [#allocation7], 1 }
 0x2b5   :  { %3164 = vsyncpa [#allocation7 + $0x1], 1 }
 0x2b6   :  { %3165 = vsyncpa [#allocation5], 1 }
 0x2b7   :  { %3167 = vsyncpa [#allocation5 + $0x1], 1 }

</bundles_post_ra>
